<compile_context>
chip_gen: v6e
topology: v6e:2x2x1
jax: 0.10.0
libtpu: 0.0.40
codegen_flags: <defaults>
</compile_context>

<pallas_src>
import math
from functools import partial

import jax
import jax.numpy as jnp
from jax import lax
from jax.experimental import pallas as pl
from jax.experimental.pallas import tpu as pltpu


# ----------------------------- in-kernel helpers -----------------------------

def _layernorm(x, gamma, beta, eps=1e-5):
    mu = jnp.mean(x, axis=-1, keepdims=True)
    var = jnp.mean((x - mu) ** 2, axis=-1, keepdims=True)
    return (x - mu) * lax.rsqrt(var + eps) * gamma + beta


def _softmax(x):
    m = jnp.max(x, axis=-1, keepdims=True)
    e = jnp.exp(x - m)
    # single approx reciprocal (EUP slot) + multiply instead of a divide
    return e * pl.reciprocal(jnp.sum(e, axis=-1, keepdims=True), approx=True)


def _gelu_exact(x):
    # matches torch.nn.GELU() default (erf-based)
    return 0.5 * x * (1.0 + lax.erf(x * (1.0 / math.sqrt(2.0))))


# --------------------------------- the kernel --------------------------------

def dit1d_kernel(heads,
                 x_ref, pos_ref, emb_w_ref, emb_b_ref,
                 ln1_w_ref, ln1_b_ref, qkv_w_ref, qkv_b_ref,
                 Et_ref, Ft_ref, ow_w_ref, ow_b_ref,
                 ln2_w_ref, ln2_b_ref, ff1_w_ref, ff1_b_ref,
                 ff2_w_ref, ff2_b_ref, norm_w_ref, norm_b_ref,
                 fc_w_ref, fc_b_ref,
                 out_ref, h_ref, attn_ref):
    D = pos_ref.shape[-1]
    hd = D // heads
    scale = float(hd) ** -0.5
    l = pl.program_id(1)
    bf16 = jnp.bfloat16
    f32 = jnp.float32

    # ---- layer 0: embedding + positional embedding into the persistent h ----
    @pl.when(l == 0)
    def _():
        xb = x_ref[0].astype(bf16)
        h_ref[...] = (jnp.dot(xb, emb_w_ref[...], preferred_element_type=f32)
                      + emb_b_ref[...] + pos_ref[...])

    h = h_ref[...]                                                   # (L, D) f32

    # ---- attention branch: h + attn(ln1(h)) ----
    y = _layernorm(h, ln1_w_ref[0], ln1_b_ref[0])
    qkv = (jnp.dot(y.astype(bf16), qkv_w_ref[0], preferred_element_type=f32)
           + qkv_b_ref[0])                                           # (L, 3D)
    q16 = qkv[:, :D].astype(bf16)
    k16 = qkv[:, D:2 * D].astype(bf16)
    v16 = qkv[:, 2 * D:].astype(bf16)
    # Linformer projections for ALL heads in one matmul each (no transposes)
    kE16 = jnp.dot(Et_ref[0], k16, preferred_element_type=f32).astype(bf16)  # (kp, D)
    vF16 = jnp.dot(Ft_ref[0], v16, preferred_element_type=f32).astype(bf16)  # (kp, D)

    # per-head results written straight into a VMEM scratch slice (no concat).
    # TODO(synk): at production sizes (hd,kp multiples of 128/8) fold heads into
    # a single 3-D batched dot_general instead of this static unroll.
    for hh in range(heads):
        c = slice(hh * hd, (hh + 1) * hd)
        s = lax.dot_general(q16[:, c], kE16[:, c], (((1,), (1,)), ((), ())),
                            preferred_element_type=f32) * scale      # (L, kp)
        a = _softmax(s)
        attn_ref[:, c] = jnp.dot(a.astype(bf16), vF16[:, c],
                                 preferred_element_type=f32)         # (L, hd)

    attn_out = (jnp.dot(attn_ref[...].astype(bf16), ow_w_ref[0],
                        preferred_element_type=f32) + ow_b_ref[0])
    h = h + attn_out

    # ---- MLP branch: h + ff(ln2(h)) ----
    y = _layernorm(h, ln2_w_ref[0], ln2_b_ref[0])
    f = (jnp.dot(y.astype(bf16), ff1_w_ref[0], preferred_element_type=f32)
         + ff1_b_ref[0])
    f = _gelu_exact(f)
    f = (jnp.dot(f.astype(bf16), ff2_w_ref[0], preferred_element_type=f32)
         + ff2_b_ref[0])
    h = h + f
    h_ref[...] = h

    # ---- last layer: final norm, mean pool (sublane reduction), output head ----
    @pl.when(l == pl.num_programs(1) - 1)
    def _():
        hn = _layernorm(h, norm_w_ref[...], norm_b_ref[...])
        pooled = jnp.mean(hn, axis=0, keepdims=True)                 # (1, D)
        out_ref[0] = (jnp.dot(pooled, fc_w_ref[...],
                              preferred_element_type=f32) + fc_b_ref[...])


# ------------------------------ JAX-side wrapper ------------------------------

def positional_embedding(seq_len, dim):
    # identical to PositionalEmbedding.forward (deterministic, no params)
    half = dim // 2
    emb = math.log(10000.0) / (half - 1)
    freqs = jnp.exp(jnp.arange(half, dtype=jnp.float32) * -emb)
    ang = jnp.arange(seq_len, dtype=jnp.float32)[:, None] * freqs[None, :]
    return jnp.concatenate([jnp.sin(ang), jnp.cos(ang)], axis=-1)    # (L, dim)


def _derive_vmem_limit(L, dim, mlp_dim, kp, in_dim, out_dim):
    """Shape-derived scoped-VMEM limit (bytes), clamped to a v7x-safe cap."""
    bf, f4 = 2, 4
    layer = ((dim * 3 * dim + dim * dim + 2 * dim * mlp_dim + 2 * kp * L) * bf
             + (3 * dim + 6 * dim + mlp_dim) * f4)                    # one layer's params
    resident = ((L * in_dim + L * dim + 4 * dim + 2 * out_dim) * f4
                + in_dim * dim * bf + dim * out_dim * f4)
    scratch = 2 * L * dim * f4
    acts = L * (3 * dim + mlp_dim + 4 * dim) * f4
    est = 2 * layer + 2 * resident + scratch + acts                   # double-buffered
    est = int(est * 1.5) + (4 << 20)                                  # headroom
    return max(32 << 20, min(est, 56 << 20))                          # 56 MiB v7x cap


def dit1d_forward(x, params, *, depth, heads):
    B, L, in_dim = x.shape
    dim = params["emb_w"].shape[1]
    mlp_dim = params["ff1_w"].shape[-1]
    kp = params["E"].shape[-1]
    out_dim = params["fc_w"].shape[1]
    assert dim % heads == 0, "dim must be divisible by heads"
    assert dim % 2 == 0, "dim must be even for the positional embedding"

    bf16 = jnp.bfloat16
    pos = positional_embedding(L, dim)                                # (L, dim)
    # fuse QKV weights/biases, pre-transpose E/F, cast big weights to bf16
    qkv_w = jnp.concatenate([params["qw_w"], params["kw_w"], params["vw_w"]],
                            axis=-1).astype(bf16)                     # (depth, dim, 3dim)
    qkv_b = jnp.concatenate([params["qw_b"], params["kw_b"], params["vw_b"]],
                            axis=-1)[:, None, :]                      # (depth, 1, 3dim)
    Et = jnp.swapaxes(params["E"], 1, 2).astype(bf16)                 # (depth, kp, L)
    Ft = jnp.swapaxes(params["F"], 1, 2).astype(bf16)

    def vec(name):          # (depth, w) fp32 -> (depth, 1, w) fp32
        return params[name][:, None, :]

    inputs = [
        x, pos, params["emb_w"].astype(bf16), params["emb_b"],
        vec("ln1_w"), vec("ln1_b"), qkv_w, qkv_b, Et, Ft,
        params["ow_w"].astype(bf16), vec("ow_b"),
        vec("ln2_w"), vec("ln2_b"),
        params["ff1_w"].astype(bf16), vec("ff1_b"),
        params["ff2_w"].astype(bf16), vec("ff2_b"),
        params["norm_w"], params["norm_b"], params["fc_w"], params["fc_b"],
    ]

    def resident(shape):    # small arrays kept resident (same block every step)
        return pl.BlockSpec(shape, lambda b, l, _n=len(shape): (0,) * _n)

    def per_layer(shape):   # per-layer weights streamed along the depth axis
        return pl.BlockSpec((1,) + shape, lambda b, l: (l, 0, 0))

    in_specs = [
        pl.BlockSpec((1, L, in_dim), lambda b, l: (b, 0, 0)),         # x
        resident((L, dim)),                                           # pos
        resident((in_dim, dim)),                                      # emb_w
        resident((1, dim)),                                           # emb_b
        per_layer((1, dim)), per_layer((1, dim)),                     # ln1 w/b
        per_layer((dim, 3 * dim)), per_layer((1, 3 * dim)),           # qkv w/b
        per_layer((kp, L)), per_layer((kp, L)),                       # Et, Ft
        per_layer((dim, dim)), per_layer((1, dim)),                   # ow w/b
        per_layer((1, dim)), per_layer((1, dim)),                     # ln2 w/b
        per_layer((dim, mlp_dim)), per_layer((1, mlp_dim)),           # ff1 w/b
        per_layer((mlp_dim, dim)), per_layer((1, dim)),               # ff2 w/b
        resident((1, dim)), resident((1, dim)),                       # final norm w/b
        resident((dim, out_dim)), resident((1, out_dim)),             # fc w/b
    ]

    out = pl.pallas_call(
        partial(dit1d_kernel, heads),
        out_shape=jax.ShapeDtypeStruct((B, 1, out_dim), jnp.float32),
        grid=(B, depth),
        in_specs=in_specs,
        out_specs=pl.BlockSpec((1, 1, out_dim), lambda b, l: (b, 0, 0)),
        scratch_shapes=[pltpu.VMEM((L, dim), jnp.float32),            # h (persistent)
                        pltpu.VMEM((L, dim), jnp.float32)],           # attn heads out
        compiler_params=pltpu.CompilerParams(
            dimension_semantics=("parallel", "arbitrary"),
            vmem_limit_bytes=_derive_vmem_limit(L, dim, mlp_dim, kp, in_dim, out_dim)),
    )(*inputs)
    return out.reshape(B, out_dim)


def init_params(key, *, seq_len, dim, depth, heads, mlp_dim, k, input_dim, output_dim):
    keys = iter(jax.random.split(key, 32))

    def w(shape, s=0.02):
        return s * jax.random.normal(next(keys), shape, dtype=jnp.float32)

    p = {}
    p["emb_w"] = w((input_dim, dim))
    p["emb_b"] = jnp.zeros((1, dim), jnp.float32)
    # per-transformer-block parameters, stacked on a leading depth axis
    p["ln1_w"] = jnp.ones((depth, dim), jnp.float32)
    p["ln1_b"] = jnp.zeros((depth, dim), jnp.float32)
    p["qw_w"] = w((depth, dim, dim)); p["qw_b"] = w((depth, dim))
    p["kw_w"] = w((depth, dim, dim)); p["kw_b"] = w((depth, dim))
    p["vw_w"] = w((depth, dim, dim)); p["vw_b"] = w((depth, dim))
    p["E"] = w((depth, seq_len, k), s=1.0)      # torch.randn in reference
    p["F"] = w((depth, seq_len, k), s=1.0)
    p["ow_w"] = w((depth, dim, dim)); p["ow_b"] = w((depth, dim))
    p["ln2_w"] = jnp.ones((depth, dim), jnp.float32)
    p["ln2_b"] = jnp.zeros((depth, dim), jnp.float32)
    p["ff1_w"] = w((depth, dim, mlp_dim)); p["ff1_b"] = w((depth, mlp_dim))
    p["ff2_w"] = w((depth, mlp_dim, dim)); p["ff2_b"] = w((depth, dim))
    # final norm + head
    p["norm_w"] = jnp.ones((1, dim), jnp.float32)
    p["norm_b"] = jnp.zeros((1, dim), jnp.float32)
    p["fc_w"] = w((dim, output_dim))
    p["fc_b"] = jnp.zeros((1, output_dim), jnp.float32)
    return p


if __name__ == "__main__":
    B = 2
    seq_len, dim, depth, heads, mlp_dim, k_proj = 8, 32, 2, 4, 64, 4
    input_dim, output_dim = 16, 8

    key = jax.random.PRNGKey(0)
    kx, kp = jax.random.split(key)
    x = jax.random.normal(kx, (B, seq_len, input_dim), dtype=jnp.float32)
    params = init_params(kp, seq_len=seq_len, dim=dim, depth=depth, heads=heads,
                         mlp_dim=mlp_dim, k=k_proj, input_dim=input_dim,
                         output_dim=output_dim)

    out = dit1d_forward(x, params, depth=depth, heads=heads)
    out = jax.block_until_ready(out)
    assert out.shape == (B, output_dim), out.shape
    assert bool(jnp.all(jnp.isfinite(out)))
    print("KERNEL_OK")
</pallas_src>

<mosaic_0001>
module attributes {stable_mosaic.version = 11 : i64} {
  func.func @dit1d_kernel(%arg0: i32, %arg1: i32, %arg2: memref<1x8x16xf32, #tpu.memory_space<vmem>>, %arg3: memref<8x32xf32, #tpu.memory_space<vmem>>, %arg4: memref<16x32xbf16, #tpu.memory_space<vmem>>, %arg5: memref<1x32xf32, #tpu.memory_space<vmem>>, %arg6: memref<1x1x32xf32, #tpu.memory_space<vmem>>, %arg7: memref<1x1x32xf32, #tpu.memory_space<vmem>>, %arg8: memref<1x32x96xbf16, #tpu.memory_space<vmem>>, %arg9: memref<1x1x96xf32, #tpu.memory_space<vmem>>, %arg10: memref<1x4x8xbf16, #tpu.memory_space<vmem>>, %arg11: memref<1x4x8xbf16, #tpu.memory_space<vmem>>, %arg12: memref<1x32x32xbf16, #tpu.memory_space<vmem>>, %arg13: memref<1x1x32xf32, #tpu.memory_space<vmem>>, %arg14: memref<1x1x32xf32, #tpu.memory_space<vmem>>, %arg15: memref<1x1x32xf32, #tpu.memory_space<vmem>>, %arg16: memref<1x32x64xbf16, #tpu.memory_space<vmem>>, %arg17: memref<1x1x64xf32, #tpu.memory_space<vmem>>, %arg18: memref<1x64x32xbf16, #tpu.memory_space<vmem>>, %arg19: memref<1x1x32xf32, #tpu.memory_space<vmem>>, %arg20: memref<1x32xf32, #tpu.memory_space<vmem>>, %arg21: memref<1x32xf32, #tpu.memory_space<vmem>>, %arg22: memref<32x8xf32, #tpu.memory_space<vmem>>, %arg23: memref<1x8xf32, #tpu.memory_space<vmem>>, %arg24: memref<1x1x8xf32, #tpu.memory_space<vmem>>, %arg25: memref<8x32xf32, #tpu.memory_space<vmem>>, %arg26: memref<8x32xf32, #tpu.memory_space<vmem>>) attributes {dimension_semantics = [#tpu.dimension_semantics<parallel>, #tpu.dimension_semantics<arbitrary>], iteration_bounds = array<i64: 2, 2>, scalar_prefetch = 0 : i64, scratch_operands = 2 : i64, tpu.core_type = #tpu.core_type<tc>, window_params = [{transform_indices = @transform_0, window_bounds = array<i64: 1, 8, 16>}, {pipeline_mode = #tpu.pipeline_mode<synchronous>, transform_indices = @transform_1, window_bounds = array<i64: 8, 32>}, {pipeline_mode = #tpu.pipeline_mode<synchronous>, transform_indices = @transform_2, window_bounds = array<i64: 16, 32>}, {pipeline_mode = #tpu.pipeline_mode<synchronous>, transform_indices = @transform_3, window_bounds = array<i64: 1, 32>}, {transform_indices = @transform_4, window_bounds = array<i64: 1, 1, 32>}, {transform_indices = @transform_5, window_bounds = array<i64: 1, 1, 32>}, {transform_indices = @transform_6, window_bounds = array<i64: 1, 32, 96>}, {transform_indices = @transform_7, window_bounds = array<i64: 1, 1, 96>}, {transform_indices = @transform_8, window_bounds = array<i64: 1, 4, 8>}, {transform_indices = @transform_9, window_bounds = array<i64: 1, 4, 8>}, {transform_indices = @transform_10, window_bounds = array<i64: 1, 32, 32>}, {transform_indices = @transform_11, window_bounds = array<i64: 1, 1, 32>}, {transform_indices = @transform_12, window_bounds = array<i64: 1, 1, 32>}, {transform_indices = @transform_13, window_bounds = array<i64: 1, 1, 32>}, {transform_indices = @transform_14, window_bounds = array<i64: 1, 32, 64>}, {transform_indices = @transform_15, window_bounds = array<i64: 1, 1, 64>}, {transform_indices = @transform_16, window_bounds = array<i64: 1, 64, 32>}, {transform_indices = @transform_17, window_bounds = array<i64: 1, 1, 32>}, {pipeline_mode = #tpu.pipeline_mode<synchronous>, transform_indices = @transform_18, window_bounds = array<i64: 1, 32>}, {pipeline_mode = #tpu.pipeline_mode<synchronous>, transform_indices = @transform_19, window_bounds = array<i64: 1, 32>}, {pipeline_mode = #tpu.pipeline_mode<synchronous>, transform_indices = @transform_20, window_bounds = array<i64: 32, 8>}, {pipeline_mode = #tpu.pipeline_mode<synchronous>, transform_indices = @transform_21, window_bounds = array<i64: 1, 8>}, {transform_indices = @transform_22, window_bounds = array<i64: 1, 1, 8>}]} {
    %c0_i32 = arith.constant 0 : i32
    %0 = arith.cmpi eq, %arg1, %c0_i32 : i32
    %1 = arith.extui %0 : i1 to i32
    %c0_i32_0 = arith.constant 0 : i32
    %2 = arith.cmpi ne, %1, %c0_i32_0 : i32
    scf.if %2 {
      %c0_92 = arith.constant 0 : index
      %c0_93 = arith.constant 0 : index
      %c0_94 = arith.constant 0 : index
      %193 = vector.load %arg2[%c0_92, %c0_93, %c0_94] : memref<1x8x16xf32, #tpu.memory_space<vmem>>, vector<1x8x16xf32>
      %194 = vector.shape_cast %193 : vector<1x8x16xf32> to vector<8x16xf32>
      %195 = arith.truncf %194 : vector<8x16xf32> to vector<8x16xbf16>
      %c0_95 = arith.constant 0 : index
      %c0_96 = arith.constant 0 : index
      %196 = vector.load %arg4[%c0_95, %c0_96] : memref<16x32xbf16, #tpu.memory_space<vmem>>, vector<16x32xbf16>
      %cst_97 = arith.constant dense<0.000000e+00> : vector<8x32xf32>
      %197 = tpu.matmul %195, %196, %cst_97 {dimension_numbers = #tpu.dot_dimension_numbers<[1], [0], [0], [1], [0, 0, 1, 1], [], []>} : vector<8x16xbf16>, vector<16x32xbf16>, vector<8x32xf32> -> vector<8x32xf32>
      %c0_98 = arith.constant 0 : index
      %c0_99 = arith.constant 0 : index
      %198 = vector.load %arg5[%c0_98, %c0_99] : memref<1x32xf32, #tpu.memory_space<vmem>>, vector<1x32xf32>
      %199 = vector.broadcast %198 : vector<1x32xf32> to vector<8x32xf32>
      %200 = arith.addf %197, %199 : vector<8x32xf32>
      %c0_100 = arith.constant 0 : index
      %c0_101 = arith.constant 0 : index
      %201 = vector.load %arg3[%c0_100, %c0_101] : memref<8x32xf32, #tpu.memory_space<vmem>>, vector<8x32xf32>
      %202 = arith.addf %200, %201 : vector<8x32xf32>
      %c0_102 = arith.constant 0 : index
      %c0_103 = arith.constant 0 : index
      %203 = vector.load %arg25[%c0_102, %c0_103] : memref<8x32xf32, #tpu.memory_space<vmem>>, vector<8x32xf32>
      tpu.vector_store %arg25[%c0_102, %c0_103], %202 {strides = array<i32>} : memref<8x32xf32, #tpu.memory_space<vmem>>, vector<8x32xf32>,
    } else {
    }
    %c0 = arith.constant 0 : index
    %c0_1 = arith.constant 0 : index
    %3 = vector.load %arg25[%c0, %c0_1] : memref<8x32xf32, #tpu.memory_space<vmem>>, vector<8x32xf32>
    %c0_2 = arith.constant 0 : index
    %c0_3 = arith.constant 0 : index
    %c0_4 = arith.constant 0 : index
    %4 = vector.load %arg6[%c0_2, %c0_3, %c0_4] : memref<1x1x32xf32, #tpu.memory_space<vmem>>, vector<1x1x32xf32>
    %5 = vector.shape_cast %4 : vector<1x1x32xf32> to vector<1x32xf32>
    %c0_5 = arith.constant 0 : index
    %c0_6 = arith.constant 0 : index
    %c0_7 = arith.constant 0 : index
    %6 = vector.load %arg7[%c0_5, %c0_6, %c0_7] : memref<1x1x32xf32, #tpu.memory_space<vmem>>, vector<1x1x32xf32>
    %7 = vector.shape_cast %6 : vector<1x1x32xf32> to vector<1x32xf32>
    %cst = arith.constant dense<0.000000e+00> : vector<8xf32>
    %8 = vector.multi_reduction <add>, %3, %cst [1] : vector<8x32xf32> to vector<8xf32>
    %9 = vector.shape_cast %8 : vector<8xf32> to vector<8x1xf32>
    %cst_8 = arith.constant 3.200000e+01 : f32
    %10 = vector.broadcast %cst_8 : f32 to vector<8x1xf32>
    %11 = arith.divf %9, %10 : vector<8x1xf32>
    %12 = vector.broadcast %11 : vector<8x1xf32> to vector<8x32xf32>
    %13 = arith.subf %3, %12 : vector<8x32xf32>
    %14 = arith.mulf %13, %13 : vector<8x32xf32>
    %cst_9 = arith.constant dense<0.000000e+00> : vector<8xf32>
    %15 = vector.multi_reduction <add>, %14, %cst_9 [1] : vector<8x32xf32> to vector<8xf32>
    %16 = vector.shape_cast %15 : vector<8xf32> to vector<8x1xf32>
    %cst_10 = arith.constant 3.200000e+01 : f32
    %17 = vector.broadcast %cst_10 : f32 to vector<8x1xf32>
    %18 = arith.divf %16, %17 : vector<8x1xf32>
    %19 = vector.broadcast %11 : vector<8x1xf32> to vector<8x32xf32>
    %20 = arith.subf %3, %19 : vector<8x32xf32>
    %cst_11 = arith.constant 9.99999974E-6 : f32
    %21 = vector.broadcast %cst_11 : f32 to vector<8x1xf32>
    %22 = arith.addf %18, %21 : vector<8x1xf32>
    %23 = math.rsqrt %22 : vector<8x1xf32>
    %24 = vector.broadcast %23 : vector<8x1xf32> to vector<8x32xf32>
    %25 = arith.mulf %20, %24 : vector<8x32xf32>
    %26 = vector.broadcast %5 : vector<1x32xf32> to vector<8x32xf32>
    %27 = arith.mulf %25, %26 : vector<8x32xf32>
    %28 = vector.broadcast %7 : vector<1x32xf32> to vector<8x32xf32>
    %29 = arith.addf %27, %28 : vector<8x32xf32>
    %30 = arith.truncf %29 : vector<8x32xf32> to vector<8x32xbf16>
    %c0_12 = arith.constant 0 : index
    %c0_13 = arith.constant 0 : index
    %c0_14 = arith.constant 0 : index
    %31 = vector.load %arg8[%c0_12, %c0_13, %c0_14] : memref<1x32x96xbf16, #tpu.memory_space<vmem>>, vector<1x32x96xbf16>
    %32 = vector.shape_cast %31 : vector<1x32x96xbf16> to vector<32x96xbf16>
    %cst_15 = arith.constant dense<0.000000e+00> : vector<8x96xf32>
    %33 = tpu.matmul %30, %32, %cst_15 {dimension_numbers = #tpu.dot_dimension_numbers<[1], [0], [0], [1], [0, 0, 1, 1], [], []>} : vector<8x32xbf16>, vector<32x96xbf16>, vector<8x96xf32> -> vector<8x96xf32>
    %c0_16 = arith.constant 0 : index
    %c0_17 = arith.constant 0 : index
    %c0_18 = arith.constant 0 : index
    %34 = vector.load %arg9[%c0_16, %c0_17, %c0_18] : memref<1x1x96xf32, #tpu.memory_space<vmem>>, vector<1x1x96xf32>
    %35 = vector.shape_cast %34 : vector<1x1x96xf32> to vector<1x96xf32>
    %36 = vector.broadcast %35 : vector<1x96xf32> to vector<8x96xf32>
    %37 = arith.addf %33, %36 : vector<8x96xf32>
    %38 = vector.extract_strided_slice %37 {offsets = [0, 0], sizes = [8, 32], strides = [1, 1]} : vector<8x96xf32> to vector<8x32xf32>
    %39 = arith.truncf %38 : vector<8x32xf32> to vector<8x32xbf16>
    %40 = vector.extract_strided_slice %37 {offsets = [0, 32], sizes = [8, 32], strides = [1, 1]} : vector<8x96xf32> to vector<8x32xf32>
    %41 = arith.truncf %40 : vector<8x32xf32> to vector<8x32xbf16>
    %42 = vector.extract_strided_slice %37 {offsets = [0, 64], sizes = [8, 32], strides = [1, 1]} : vector<8x96xf32> to vector<8x32xf32>
    %43 = arith.truncf %42 : vector<8x32xf32> to vector<8x32xbf16>
    %c0_19 = arith.constant 0 : index
    %c0_20 = arith.constant 0 : index
    %c0_21 = arith.constant 0 : index
    %44 = vector.load %arg10[%c0_19, %c0_20, %c0_21] : memref<1x4x8xbf16, #tpu.memory_space<vmem>>, vector<1x4x8xbf16>
    %45 = vector.shape_cast %44 : vector<1x4x8xbf16> to vector<4x8xbf16>
    %cst_22 = arith.constant dense<0.000000e+00> : vector<4x32xf32>
    %46 = tpu.matmul %45, %41, %cst_22 {dimension_numbers = #tpu.dot_dimension_numbers<[1], [0], [0], [1], [0, 0, 1, 1], [], []>} : vector<4x8xbf16>, vector<8x32xbf16>, vector<4x32xf32> -> vector<4x32xf32>
    %47 = arith.truncf %46 : vector<4x32xf32> to vector<4x32xbf16>
    %c0_23 = arith.constant 0 : index
    %c0_24 = arith.constant 0 : index
    %c0_25 = arith.constant 0 : index
    %48 = vector.load %arg11[%c0_23, %c0_24, %c0_25] : memref<1x4x8xbf16, #tpu.memory_space<vmem>>, vector<1x4x8xbf16>
    %49 = vector.shape_cast %48 : vector<1x4x8xbf16> to vector<4x8xbf16>
    %cst_26 = arith.constant dense<0.000000e+00> : vector<4x32xf32>
    %50 = tpu.matmul %49, %43, %cst_26 {dimension_numbers = #tpu.dot_dimension_numbers<[1], [0], [0], [1], [0, 0, 1, 1], [], []>} : vector<4x8xbf16>, vector<8x32xbf16>, vector<4x32xf32> -> vector<4x32xf32>
    %51 = arith.truncf %50 : vector<4x32xf32> to vector<4x32xbf16>
    %52 = vector.extract_strided_slice %39 {offsets = [0, 0], sizes = [8, 8], strides = [1, 1]} : vector<8x32xbf16> to vector<8x8xbf16>
    %53 = vector.extract_strided_slice %47 {offsets = [0, 0], sizes = [4, 8], strides = [1, 1]} : vector<4x32xbf16> to vector<4x8xbf16>
    %cst_27 = arith.constant dense<0.000000e+00> : vector<8x4xf32>
    %54 = tpu.matmul %52, %53, %cst_27 {dimension_numbers = #tpu.dot_dimension_numbers<[1], [1], [0], [0], [0, 0, 1, 0], [], []>} : vector<8x8xbf16>, vector<4x8xbf16>, vector<8x4xf32> -> vector<8x4xf32>
    %cst_28 = arith.constant 0.353553385 : f32
    %55 = vector.broadcast %cst_28 : f32 to vector<8x4xf32>
    %56 = arith.mulf %54, %55 : vector<8x4xf32>
    %cst_29 = arith.constant dense<0xFF800000> : vector<8xf32>
    %57 = vector.multi_reduction <maximumf>, %56, %cst_29 [1] : vector<8x4xf32> to vector<8xf32>
    %58 = vector.shape_cast %57 : vector<8xf32> to vector<8x1xf32>
    %59 = vector.broadcast %58 : vector<8x1xf32> to vector<8x4xf32>
    %60 = arith.subf %56, %59 : vector<8x4xf32>
    %61 = math.exp %60 : vector<8x4xf32>
    %cst_30 = arith.constant dense<0.000000e+00> : vector<8xf32>
    %62 = vector.multi_reduction <add>, %61, %cst_30 [1] : vector<8x4xf32> to vector<8xf32>
    %63 = vector.shape_cast %62 : vector<8xf32> to vector<8x1xf32>
    %64 = tpu.reciprocal %63 {approx = true} : vector<8x1xf32> -> vector<8x1xf32>
    %65 = vector.broadcast %64 : vector<8x1xf32> to vector<8x4xf32>
    %66 = arith.mulf %61, %65 : vector<8x4xf32>
    %67 = arith.truncf %66 : vector<8x4xf32> to vector<8x4xbf16>
    %68 = vector.extract_strided_slice %51 {offsets = [0, 0], sizes = [4, 8], strides = [1, 1]} : vector<4x32xbf16> to vector<4x8xbf16>
    %cst_31 = arith.constant dense<0.000000e+00> : vector<8x8xf32>
    %69 = tpu.matmul %67, %68, %cst_31 {dimension_numbers = #tpu.dot_dimension_numbers<[1], [0], [0], [1], [0, 0, 1, 1], [], []>} : vector<8x4xbf16>, vector<4x8xbf16>, vector<8x8xf32> -> vector<8x8xf32>
    %c0_32 = arith.constant 0 : index
    %c0_33 = arith.constant 0 : index
    %70 = vector.load %arg26[%c0_32, %c0_33] : memref<8x32xf32, #tpu.memory_space<vmem>>, vector<8x8xf32>
    tpu.vector_store %arg26[%c0_32, %c0_33], %69 {strides = array<i32>} : memref<8x32xf32, #tpu.memory_space<vmem>>, vector<8x8xf32>,
    %71 = vector.extract_strided_slice %39 {offsets = [0, 8], sizes = [8, 8], strides = [1, 1]} : vector<8x32xbf16> to vector<8x8xbf16>
    %72 = vector.extract_strided_slice %47 {offsets = [0, 8], sizes = [4, 8], strides = [1, 1]} : vector<4x32xbf16> to vector<4x8xbf16>
    %cst_34 = arith.constant dense<0.000000e+00> : vector<8x4xf32>
    %73 = tpu.matmul %71, %72, %cst_34 {dimension_numbers = #tpu.dot_dimension_numbers<[1], [1], [0], [0], [0, 0, 1, 0], [], []>} : vector<8x8xbf16>, vector<4x8xbf16>, vector<8x4xf32> -> vector<8x4xf32>
    %cst_35 = arith.constant 0.353553385 : f32
    %74 = vector.broadcast %cst_35 : f32 to vector<8x4xf32>
    %75 = arith.mulf %73, %74 : vector<8x4xf32>
    %cst_36 = arith.constant dense<0xFF800000> : vector<8xf32>
    %76 = vector.multi_reduction <maximumf>, %75, %cst_36 [1] : vector<8x4xf32> to vector<8xf32>
    %77 = vector.shape_cast %76 : vector<8xf32> to vector<8x1xf32>
    %78 = vector.broadcast %77 : vector<8x1xf32> to vector<8x4xf32>
    %79 = arith.subf %75, %78 : vector<8x4xf32>
    %80 = math.exp %79 : vector<8x4xf32>
    %cst_37 = arith.constant dense<0.000000e+00> : vector<8xf32>
    %81 = vector.multi_reduction <add>, %80, %cst_37 [1] : vector<8x4xf32> to vector<8xf32>
    %82 = vector.shape_cast %81 : vector<8xf32> to vector<8x1xf32>
    %83 = tpu.reciprocal %82 {approx = true} : vector<8x1xf32> -> vector<8x1xf32>
    %84 = vector.broadcast %83 : vector<8x1xf32> to vector<8x4xf32>
    %85 = arith.mulf %80, %84 : vector<8x4xf32>
    %86 = arith.truncf %85 : vector<8x4xf32> to vector<8x4xbf16>
    %87 = vector.extract_strided_slice %51 {offsets = [0, 8], sizes = [4, 8], strides = [1, 1]} : vector<4x32xbf16> to vector<4x8xbf16>
    %cst_38 = arith.constant dense<0.000000e+00> : vector<8x8xf32>
    %88 = tpu.matmul %86, %87, %cst_38 {dimension_numbers = #tpu.dot_dimension_numbers<[1], [0], [0], [1], [0, 0, 1, 1], [], []>} : vector<8x4xbf16>, vector<4x8xbf16>, vector<8x8xf32> -> vector<8x8xf32>
    %c0_39 = arith.constant 0 : index
    %c8 = arith.constant 8 : index
    %89 = vector.load %arg26[%c0_39, %c8] : memref<8x32xf32, #tpu.memory_space<vmem>>, vector<8x8xf32>
    tpu.vector_store %arg26[%c0_39, %c8], %88 {strides = array<i32>} : memref<8x32xf32, #tpu.memory_space<vmem>>, vector<8x8xf32>,
    %90 = vector.extract_strided_slice %39 {offsets = [0, 16], sizes = [8, 8], strides = [1, 1]} : vector<8x32xbf16> to vector<8x8xbf16>
    %91 = vector.extract_strided_slice %47 {offsets = [0, 16], sizes = [4, 8], strides = [1, 1]} : vector<4x32xbf16> to vector<4x8xbf16>
    %cst_40 = arith.constant dense<0.000000e+00> : vector<8x4xf32>
    %92 = tpu.matmul %90, %91, %cst_40 {dimension_numbers = #tpu.dot_dimension_numbers<[1], [1], [0], [0], [0, 0, 1, 0], [], []>} : vector<8x8xbf16>, vector<4x8xbf16>, vector<8x4xf32> -> vector<8x4xf32>
    %cst_41 = arith.constant 0.353553385 : f32
    %93 = vector.broadcast %cst_41 : f32 to vector<8x4xf32>
    %94 = arith.mulf %92, %93 : vector<8x4xf32>
    %cst_42 = arith.constant dense<0xFF800000> : vector<8xf32>
    %95 = vector.multi_reduction <maximumf>, %94, %cst_42 [1] : vector<8x4xf32> to vector<8xf32>
    %96 = vector.shape_cast %95 : vector<8xf32> to vector<8x1xf32>
    %97 = vector.broadcast %96 : vector<8x1xf32> to vector<8x4xf32>
    %98 = arith.subf %94, %97 : vector<8x4xf32>
    %99 = math.exp %98 : vector<8x4xf32>
    %cst_43 = arith.constant dense<0.000000e+00> : vector<8xf32>
    %100 = vector.multi_reduction <add>, %99, %cst_43 [1] : vector<8x4xf32> to vector<8xf32>
    %101 = vector.shape_cast %100 : vector<8xf32> to vector<8x1xf32>
    %102 = tpu.reciprocal %101 {approx = true} : vector<8x1xf32> -> vector<8x1xf32>
    %103 = vector.broadcast %102 : vector<8x1xf32> to vector<8x4xf32>
    %104 = arith.mulf %99, %103 : vector<8x4xf32>
    %105 = arith.truncf %104 : vector<8x4xf32> to vector<8x4xbf16>
    %106 = vector.extract_strided_slice %51 {offsets = [0, 16], sizes = [4, 8], strides = [1, 1]} : vector<4x32xbf16> to vector<4x8xbf16>
    %cst_44 = arith.constant dense<0.000000e+00> : vector<8x8xf32>
    %107 = tpu.matmul %105, %106, %cst_44 {dimension_numbers = #tpu.dot_dimension_numbers<[1], [0], [0], [1], [0, 0, 1, 1], [], []>} : vector<8x4xbf16>, vector<4x8xbf16>, vector<8x8xf32> -> vector<8x8xf32>
    %c0_45 = arith.constant 0 : index
    %c16 = arith.constant 16 : index
    %108 = vector.load %arg26[%c0_45, %c16] : memref<8x32xf32, #tpu.memory_space<vmem>>, vector<8x8xf32>
    tpu.vector_store %arg26[%c0_45, %c16], %107 {strides = array<i32>} : memref<8x32xf32, #tpu.memory_space<vmem>>, vector<8x8xf32>,
    %109 = vector.extract_strided_slice %39 {offsets = [0, 24], sizes = [8, 8], strides = [1, 1]} : vector<8x32xbf16> to vector<8x8xbf16>
    %110 = vector.extract_strided_slice %47 {offsets = [0, 24], sizes = [4, 8], strides = [1, 1]} : vector<4x32xbf16> to vector<4x8xbf16>
    %cst_46 = arith.constant dense<0.000000e+00> : vector<8x4xf32>
    %111 = tpu.matmul %109, %110, %cst_46 {dimension_numbers = #tpu.dot_dimension_numbers<[1], [1], [0], [0], [0, 0, 1, 0], [], []>} : vector<8x8xbf16>, vector<4x8xbf16>, vector<8x4xf32> -> vector<8x4xf32>
    %cst_47 = arith.constant 0.353553385 : f32
    %112 = vector.broadcast %cst_47 : f32 to vector<8x4xf32>
    %113 = arith.mulf %111, %112 : vector<8x4xf32>
    %cst_48 = arith.constant dense<0xFF800000> : vector<8xf32>
    %114 = vector.multi_reduction <maximumf>, %113, %cst_48 [1] : vector<8x4xf32> to vector<8xf32>
    %115 = vector.shape_cast %114 : vector<8xf32> to vector<8x1xf32>
    %116 = vector.broadcast %115 : vector<8x1xf32> to vector<8x4xf32>
    %117 = arith.subf %113, %116 : vector<8x4xf32>
    %118 = math.exp %117 : vector<8x4xf32>
    %cst_49 = arith.constant dense<0.000000e+00> : vector<8xf32>
    %119 = vector.multi_reduction <add>, %118, %cst_49 [1] : vector<8x4xf32> to vector<8xf32>
    %120 = vector.shape_cast %119 : vector<8xf32> to vector<8x1xf32>
    %121 = tpu.reciprocal %120 {approx = true} : vector<8x1xf32> -> vector<8x1xf32>
    %122 = vector.broadcast %121 : vector<8x1xf32> to vector<8x4xf32>
    %123 = arith.mulf %118, %122 : vector<8x4xf32>
    %124 = arith.truncf %123 : vector<8x4xf32> to vector<8x4xbf16>
    %125 = vector.extract_strided_slice %51 {offsets = [0, 24], sizes = [4, 8], strides = [1, 1]} : vector<4x32xbf16> to vector<4x8xbf16>
    %cst_50 = arith.constant dense<0.000000e+00> : vector<8x8xf32>
    %126 = tpu.matmul %124, %125, %cst_50 {dimension_numbers = #tpu.dot_dimension_numbers<[1], [0], [0], [1], [0, 0, 1, 1], [], []>} : vector<8x4xbf16>, vector<4x8xbf16>, vector<8x8xf32> -> vector<8x8xf32>
    %c0_51 = arith.constant 0 : index
    %c24 = arith.constant 24 : index
    %127 = vector.load %arg26[%c0_51, %c24] : memref<8x32xf32, #tpu.memory_space<vmem>>, vector<8x8xf32>
    tpu.vector_store %arg26[%c0_51, %c24], %126 {strides = array<i32>} : memref<8x32xf32, #tpu.memory_space<vmem>>, vector<8x8xf32>,
    %c0_52 = arith.constant 0 : index
    %c0_53 = arith.constant 0 : index
    %128 = vector.load %arg26[%c0_52, %c0_53] : memref<8x32xf32, #tpu.memory_space<vmem>>, vector<8x32xf32>
    %129 = arith.truncf %128 : vector<8x32xf32> to vector<8x32xbf16>
    %c0_54 = arith.constant 0 : index
    %c0_55 = arith.constant 0 : index
    %c0_56 = arith.constant 0 : index
    %130 = vector.load %arg12[%c0_54, %c0_55, %c0_56] : memref<1x32x32xbf16, #tpu.memory_space<vmem>>, vector<1x32x32xbf16>
    %131 = vector.shape_cast %130 : vector<1x32x32xbf16> to vector<32x32xbf16>
    %cst_57 = arith.constant dense<0.000000e+00> : vector<8x32xf32>
    %132 = tpu.matmul %129, %131, %cst_57 {dimension_numbers = #tpu.dot_dimension_numbers<[1], [0], [0], [1], [0, 0, 1, 1], [], []>} : vector<8x32xbf16>, vector<32x32xbf16>, vector<8x32xf32> -> vector<8x32xf32>
    %c0_58 = arith.constant 0 : index
    %c0_59 = arith.constant 0 : index
    %c0_60 = arith.constant 0 : index
    %133 = vector.load %arg13[%c0_58, %c0_59, %c0_60] : memref<1x1x32xf32, #tpu.memory_space<vmem>>, vector<1x1x32xf32>
    %134 = vector.shape_cast %133 : vector<1x1x32xf32> to vector<1x32xf32>
    %135 = vector.broadcast %134 : vector<1x32xf32> to vector<8x32xf32>
    %136 = arith.addf %132, %135 : vector<8x32xf32>
    %137 = arith.addf %3, %136 : vector<8x32xf32>
    %c0_61 = arith.constant 0 : index
    %c0_62 = arith.constant 0 : index
    %c0_63 = arith.constant 0 : index
    %138 = vector.load %arg14[%c0_61, %c0_62, %c0_63] : memref<1x1x32xf32, #tpu.memory_space<vmem>>, vector<1x1x32xf32>
    %139 = vector.shape_cast %138 : vector<1x1x32xf32> to vector<1x32xf32>
    %c0_64 = arith.constant 0 : index
    %c0_65 = arith.constant 0 : index
    %c0_66 = arith.constant 0 : index
    %140 = vector.load %arg15[%c0_64, %c0_65, %c0_66] : memref<1x1x32xf32, #tpu.memory_space<vmem>>, vector<1x1x32xf32>
    %141 = vector.shape_cast %140 : vector<1x1x32xf32> to vector<1x32xf32>
    %cst_67 = arith.constant dense<0.000000e+00> : vector<8xf32>
    %142 = vector.multi_reduction <add>, %137, %cst_67 [1] : vector<8x32xf32> to vector<8xf32>
    %143 = vector.shape_cast %142 : vector<8xf32> to vector<8x1xf32>
    %cst_68 = arith.constant 3.200000e+01 : f32
    %144 = vector.broadcast %cst_68 : f32 to vector<8x1xf32>
    %145 = arith.divf %143, %144 : vector<8x1xf32>
    %146 = vector.broadcast %145 : vector<8x1xf32> to vector<8x32xf32>
    %147 = arith.subf %137, %146 : vector<8x32xf32>
    %148 = arith.mulf %147, %147 : vector<8x32xf32>
    %cst_69 = arith.constant dense<0.000000e+00> : vector<8xf32>
    %149 = vector.multi_reduction <add>, %148, %cst_69 [1] : vector<8x32xf32> to vector<8xf32>
    %150 = vector.shape_cast %149 : vector<8xf32> to vector<8x1xf32>
    %cst_70 = arith.constant 3.200000e+01 : f32
    %151 = vector.broadcast %cst_70 : f32 to vector<8x1xf32>
    %152 = arith.divf %150, %151 : vector<8x1xf32>
    %153 = vector.broadcast %145 : vector<8x1xf32> to vector<8x32xf32>
    %154 = arith.subf %137, %153 : vector<8x32xf32>
    %cst_71 = arith.constant 9.99999974E-6 : f32
    %155 = vector.broadcast %cst_71 : f32 to vector<8x1xf32>
    %156 = arith.addf %152, %155 : vector<8x1xf32>
    %157 = math.rsqrt %156 : vector<8x1xf32>
    %158 = vector.broadcast %157 : vector<8x1xf32> to vector<8x32xf32>
    %159 = arith.mulf %154, %158 : vector<8x32xf32>
    %160 = vector.broadcast %139 : vector<1x32xf32> to vector<8x32xf32>
    %161 = arith.mulf %159, %160 : vector<8x32xf32>
    %162 = vector.broadcast %141 : vector<1x32xf32> to vector<8x32xf32>
    %163 = arith.addf %161, %162 : vector<8x32xf32>
    %164 = arith.truncf %163 : vector<8x32xf32> to vector<8x32xbf16>
    %c0_72 = arith.constant 0 : index
    %c0_73 = arith.constant 0 : index
    %c0_74 = arith.constant 0 : index
    %165 = vector.load %arg16[%c0_72, %c0_73, %c0_74] : memref<1x32x64xbf16, #tpu.memory_space<vmem>>, vector<1x32x64xbf16>
    %166 = vector.shape_cast %165 : vector<1x32x64xbf16> to vector<32x64xbf16>
    %cst_75 = arith.constant dense<0.000000e+00> : vector<8x64xf32>
    %167 = tpu.matmul %164, %166, %cst_75 {dimension_numbers = #tpu.dot_dimension_numbers<[1], [0], [0], [1], [0, 0, 1, 1], [], []>} : vector<8x32xbf16>, vector<32x64xbf16>, vector<8x64xf32> -> vector<8x64xf32>
    %c0_76 = arith.constant 0 : index
    %c0_77 = arith.constant 0 : index
    %c0_78 = arith.constant 0 : index
    %168 = vector.load %arg17[%c0_76, %c0_77, %c0_78] : memref<1x1x64xf32, #tpu.memory_space<vmem>>, vector<1x1x64xf32>
    %169 = vector.shape_cast %168 : vector<1x1x64xf32> to vector<1x64xf32>
    %170 = vector.broadcast %169 : vector<1x64xf32> to vector<8x64xf32>
    %171 = arith.addf %167, %170 : vector<8x64xf32>
    %cst_79 = arith.constant 5.000000e-01 : f32
    %172 = vector.broadcast %cst_79 : f32 to vector<8x64xf32>
    %173 = arith.mulf %172, %171 : vector<8x64xf32>
    %cst_80 = arith.constant 0.707106769 : f32
    %174 = vector.broadcast %cst_80 : f32 to vector<8x64xf32>
    %175 = arith.mulf %171, %174 : vector<8x64xf32>
    %176 = math.erf %175 : vector<8x64xf32>
    %cst_81 = arith.constant 1.000000e+00 : f32
    %177 = vector.broadcast %cst_81 : f32 to vector<8x64xf32>
    %178 = arith.addf %177, %176 : vector<8x64xf32>
    %179 = arith.mulf %173, %178 : vector<8x64xf32>
    %180 = arith.truncf %179 : vector<8x64xf32> to vector<8x64xbf16>
    %c0_82 = arith.constant 0 : index
    %c0_83 = arith.constant 0 : index
    %c0_84 = arith.constant 0 : index
    %181 = vector.load %arg18[%c0_82, %c0_83, %c0_84] : memref<1x64x32xbf16, #tpu.memory_space<vmem>>, vector<1x64x32xbf16>
    %182 = vector.shape_cast %181 : vector<1x64x32xbf16> to vector<64x32xbf16>
    %cst_85 = arith.constant dense<0.000000e+00> : vector<8x32xf32>
    %183 = tpu.matmul %180, %182, %cst_85 {dimension_numbers = #tpu.dot_dimension_numbers<[1], [0], [0], [1], [0, 0, 1, 1], [], []>} : vector<8x64xbf16>, vector<64x32xbf16>, vector<8x32xf32> -> vector<8x32xf32>
    %c0_86 = arith.constant 0 : index
    %c0_87 = arith.constant 0 : index
    %c0_88 = arith.constant 0 : index
    %184 = vector.load %arg19[%c0_86, %c0_87, %c0_88] : memref<1x1x32xf32, #tpu.memory_space<vmem>>, vector<1x1x32xf32>
    %185 = vector.shape_cast %184 : vector<1x1x32xf32> to vector<1x32xf32>
    %186 = vector.broadcast %185 : vector<1x32xf32> to vector<8x32xf32>
    %187 = arith.addf %183, %186 : vector<8x32xf32>
    %188 = arith.addf %137, %187 : vector<8x32xf32>
    %c0_89 = arith.constant 0 : index
    %c0_90 = arith.constant 0 : index
    %189 = vector.load %arg25[%c0_89, %c0_90] : memref<8x32xf32, #tpu.memory_space<vmem>>, vector<8x32xf32>
    tpu.vector_store %arg25[%c0_89, %c0_90], %188 {strides = array<i32>} : memref<8x32xf32, #tpu.memory_space<vmem>>, vector<8x32xf32>,
    %c1_i32 = arith.constant 1 : i32
    %190 = arith.cmpi eq, %arg1, %c1_i32 : i32
    %191 = arith.extui %190 : i1 to i32
    %c0_i32_91 = arith.constant 0 : i32
    %192 = arith.cmpi ne, %191, %c0_i32_91 : i32
    scf.if %192 {
      %c0_92 = arith.constant 0 : index
      %c0_93 = arith.constant 0 : index
      %193 = vector.load %arg20[%c0_92, %c0_93] : memref<1x32xf32, #tpu.memory_space<vmem>>, vector<1x32xf32>
      %c0_94 = arith.constant 0 : index
      %c0_95 = arith.constant 0 : index
      %194 = vector.load %arg21[%c0_94, %c0_95] : memref<1x32xf32, #tpu.memory_space<vmem>>, vector<1x32xf32>
      %cst_96 = arith.constant dense<0.000000e+00> : vector<8xf32>
      %195 = vector.multi_reduction <add>, %188, %cst_96 [1] : vector<8x32xf32> to vector<8xf32>
      %196 = vector.shape_cast %195 : vector<8xf32> to vector<8x1xf32>
      %cst_97 = arith.constant 3.200000e+01 : f32
      %197 = vector.broadcast %cst_97 : f32 to vector<8x1xf32>
      %198 = arith.divf %196, %197 : vector<8x1xf32>
      %199 = vector.broadcast %198 : vector<8x1xf32> to vector<8x32xf32>
      %200 = arith.subf %188, %199 : vector<8x32xf32>
      %201 = arith.mulf %200, %200 : vector<8x32xf32>
      %cst_98 = arith.constant dense<0.000000e+00> : vector<8xf32>
      %202 = vector.multi_reduction <add>, %201, %cst_98 [1] : vector<8x32xf32> to vector<8xf32>
      %203 = vector.shape_cast %202 : vector<8xf32> to vector<8x1xf32>
      %cst_99 = arith.constant 3.200000e+01 : f32
      %204 = vector.broadcast %cst_99 : f32 to vector<8x1xf32>
      %205 = arith.divf %203, %204 : vector<8x1xf32>
      %206 = vector.broadcast %198 : vector<8x1xf32> to vector<8x32xf32>
      %207 = arith.subf %188, %206 : vector<8x32xf32>
      %cst_100 = arith.constant 9.99999974E-6 : f32
      %208 = vector.broadcast %cst_100 : f32 to vector<8x1xf32>
      %209 = arith.addf %205, %208 : vector<8x1xf32>
      %210 = math.rsqrt %209 : vector<8x1xf32>
      %211 = vector.broadcast %210 : vector<8x1xf32> to vector<8x32xf32>
      %212 = arith.mulf %207, %211 : vector<8x32xf32>
      %213 = vector.broadcast %193 : vector<1x32xf32> to vector<8x32xf32>
      %214 = arith.mulf %212, %213 : vector<8x32xf32>
      %215 = vector.broadcast %194 : vector<1x32xf32> to vector<8x32xf32>
      %216 = arith.addf %214, %215 : vector<8x32xf32>
      %cst_101 = arith.constant dense<0.000000e+00> : vector<32xf32>
      %217 = vector.multi_reduction <add>, %216, %cst_101 [0] : vector<8x32xf32> to vector<32xf32>
      %218 = vector.shape_cast %217 : vector<32xf32> to vector<1x32xf32>
      %cst_102 = arith.constant 8.000000e+00 : f32
      %219 = vector.broadcast %cst_102 : f32 to vector<1x32xf32>
      %220 = arith.divf %218, %219 : vector<1x32xf32>
      %c0_103 = arith.constant 0 : index
      %c0_104 = arith.constant 0 : index
      %221 = vector.load %arg22[%c0_103, %c0_104] : memref<32x8xf32, #tpu.memory_space<vmem>>, vector<32x8xf32>
      %cst_105 = arith.constant dense<0.000000e+00> : vector<1x8xf32>
      %222 = tpu.matmul %220, %221, %cst_105 {dimension_numbers = #tpu.dot_dimension_numbers<[1], [0], [0], [1], [0, 0, 1, 1], [], []>} : vector<1x32xf32>, vector<32x8xf32>, vector<1x8xf32> -> vector<1x8xf32>
      %c0_106 = arith.constant 0 : index
      %c0_107 = arith.constant 0 : index
      %223 = vector.load %arg23[%c0_106, %c0_107] : memref<1x8xf32, #tpu.memory_space<vmem>>, vector<1x8xf32>
      %224 = arith.addf %222, %223 : vector<1x8xf32>
      %c0_108 = arith.constant 0 : index
      %c0_109 = arith.constant 0 : index
      %c0_110 = arith.constant 0 : index
      %225 = vector.load %arg24[%c0_108, %c0_109, %c0_110] : memref<1x1x8xf32, #tpu.memory_space<vmem>>, vector<1x1x8xf32>
      %226 = vector.shape_cast %225 : vector<1x1x8xf32> to vector<1x8xf32>
      %227 = vector.shape_cast %224 : vector<1x8xf32> to vector<1x1x8xf32>
      tpu.vector_store %arg24[%c0_108, %c0_109, %c0_110], %227 {strides = array<i32>} : memref<1x1x8xf32, #tpu.memory_space<vmem>>, vector<1x1x8xf32>,
    } else {
    }
    return
  }
  func.func @transform_0(%arg0: i32, %arg1: i32) -> (i32, i32, i32) {
    %c0_i32 = arith.constant 0 : i32
    %c0_i32_0 = arith.constant 0 : i32
    %c0_i32_1 = arith.constant 0 : i32
    return %arg0, %c0_i32, %c0_i32_0 : i32, i32, i32
  }
  func.func @transform_1(%arg0: i32, %arg1: i32) -> (i32, i32) {
    %c0_i32 = arith.constant 0 : i32
    %c0_i32_0 = arith.constant 0 : i32
    %c0_i32_1 = arith.constant 0 : i32
    return %c0_i32, %c0_i32_0 : i32, i32
  }
  func.func @transform_2(%arg0: i32, %arg1: i32) -> (i32, i32) {
    %c0_i32 = arith.constant 0 : i32
    %c0_i32_0 = arith.constant 0 : i32
    %c0_i32_1 = arith.constant 0 : i32
    return %c0_i32, %c0_i32_0 : i32, i32
  }
  func.func @transform_3(%arg0: i32, %arg1: i32) -> (i32, i32) {
    %c0_i32 = arith.constant 0 : i32
    %c0_i32_0 = arith.constant 0 : i32
    %c0_i32_1 = arith.constant 0 : i32
    return %c0_i32, %c0_i32_0 : i32, i32
  }
  func.func @transform_4(%arg0: i32, %arg1: i32) -> (i32, i32, i32) {
    %c0_i32 = arith.constant 0 : i32
    %c0_i32_0 = arith.constant 0 : i32
    %c0_i32_1 = arith.constant 0 : i32
    return %arg1, %c0_i32, %c0_i32_0 : i32, i32, i32
  }
  func.func @transform_5(%arg0: i32, %arg1: i32) -> (i32, i32, i32) {
    %c0_i32 = arith.constant 0 : i32
    %c0_i32_0 = arith.constant 0 : i32
    %c0_i32_1 = arith.constant 0 : i32
    return %arg1, %c0_i32, %c0_i32_0 : i32, i32, i32
  }
  func.func @transform_6(%arg0: i32, %arg1: i32) -> (i32, i32, i32) {
    %c0_i32 = arith.constant 0 : i32
    %c0_i32_0 = arith.constant 0 : i32
    %c0_i32_1 = arith.constant 0 : i32
    return %arg1, %c0_i32, %c0_i32_0 : i32, i32, i32
  }
  func.func @transform_7(%arg0: i32, %arg1: i32) -> (i32, i32, i32) {
    %c0_i32 = arith.constant 0 : i32
    %c0_i32_0 = arith.constant 0 : i32
    %c0_i32_1 = arith.constant 0 : i32
    return %arg1, %c0_i32, %c0_i32_0 : i32, i32, i32
  }
  func.func @transform_8(%arg0: i32, %arg1: i32) -> (i32, i32, i32) {
    %c0_i32 = arith.constant 0 : i32
    %c0_i32_0 = arith.constant 0 : i32
    %c0_i32_1 = arith.constant 0 : i32
    return %arg1, %c0_i32, %c0_i32_0 : i32, i32, i32
  }
  func.func @transform_9(%arg0: i32, %arg1: i32) -> (i32, i32, i32) {
    %c0_i32 = arith.constant 0 : i32
    %c0_i32_0 = arith.constant 0 : i32
    %c0_i32_1 = arith.constant 0 : i32
    return %arg1, %c0_i32, %c0_i32_0 : i32, i32, i32
  }
  func.func @transform_10(%arg0: i32, %arg1: i32) -> (i32, i32, i32) {
    %c0_i32 = arith.constant 0 : i32
    %c0_i32_0 = arith.constant 0 : i32
    %c0_i32_1 = arith.constant 0 : i32
    return %arg1, %c0_i32, %c0_i32_0 : i32, i32, i32
  }
  func.func @transform_11(%arg0: i32, %arg1: i32) -> (i32, i32, i32) {
    %c0_i32 = arith.constant 0 : i32
    %c0_i32_0 = arith.constant 0 : i32
    %c0_i32_1 = arith.constant 0 : i32
    return %arg1, %c0_i32, %c0_i32_0 : i32, i32, i32
  }
  func.func @transform_12(%arg0: i32, %arg1: i32) -> (i32, i32, i32) {
    %c0_i32 = arith.constant 0 : i32
    %c0_i32_0 = arith.constant 0 : i32
    %c0_i32_1 = arith.constant 0 : i32
    return %arg1, %c0_i32, %c0_i32_0 : i32, i32, i32
  }
  func.func @transform_13(%arg0: i32, %arg1: i32) -> (i32, i32, i32) {
    %c0_i32 = arith.constant 0 : i32
    %c0_i32_0 = arith.constant 0 : i32
    %c0_i32_1 = arith.constant 0 : i32
    return %arg1, %c0_i32, %c0_i32_0 : i32, i32, i32
  }
  func.func @transform_14(%arg0: i32, %arg1: i32) -> (i32, i32, i32) {
    %c0_i32 = arith.constant 0 : i32
    %c0_i32_0 = arith.constant 0 : i32
    %c0_i32_1 = arith.constant 0 : i32
    return %arg1, %c0_i32, %c0_i32_0 : i32, i32, i32
  }
  func.func @transform_15(%arg0: i32, %arg1: i32) -> (i32, i32, i32) {
    %c0_i32 = arith.constant 0 : i32
    %c0_i32_0 = arith.constant 0 : i32
    %c0_i32_1 = arith.constant 0 : i32
    return %arg1, %c0_i32, %c0_i32_0 : i32, i32, i32
  }
  func.func @transform_16(%arg0: i32, %arg1: i32) -> (i32, i32, i32) {
    %c0_i32 = arith.constant 0 : i32
    %c0_i32_0 = arith.constant 0 : i32
    %c0_i32_1 = arith.constant 0 : i32
    return %arg1, %c0_i32, %c0_i32_0 : i32, i32, i32
  }
  func.func @transform_17(%arg0: i32, %arg1: i32) -> (i32, i32, i32) {
    %c0_i32 = arith.constant 0 : i32
    %c0_i32_0 = arith.constant 0 : i32
    %c0_i32_1 = arith.constant 0 : i32
    return %arg1, %c0_i32, %c0_i32_0 : i32, i32, i32
  }
  func.func @transform_18(%arg0: i32, %arg1: i32) -> (i32, i32) {
    %c0_i32 = arith.constant 0 : i32
    %c0_i32_0 = arith.constant 0 : i32
    %c0_i32_1 = arith.constant 0 : i32
    return %c0_i32, %c0_i32_0 : i32, i32
  }
  func.func @transform_19(%arg0: i32, %arg1: i32) -> (i32, i32) {
    %c0_i32 = arith.constant 0 : i32
    %c0_i32_0 = arith.constant 0 : i32
    %c0_i32_1 = arith.constant 0 : i32
    return %c0_i32, %c0_i32_0 : i32, i32
  }
  func.func @transform_20(%arg0: i32, %arg1: i32) -> (i32, i32) {
    %c0_i32 = arith.constant 0 : i32
    %c0_i32_0 = arith.constant 0 : i32
    %c0_i32_1 = arith.constant 0 : i32
    return %c0_i32, %c0_i32_0 : i32, i32
  }
  func.func @transform_21(%arg0: i32, %arg1: i32) -> (i32, i32) {
    %c0_i32 = arith.constant 0 : i32
    %c0_i32_0 = arith.constant 0 : i32
    %c0_i32_1 = arith.constant 0 : i32
    return %c0_i32, %c0_i32_0 : i32, i32
  }
  func.func @transform_22(%arg0: i32, %arg1: i32) -> (i32, i32, i32) {
    %c0_i32 = arith.constant 0 : i32
    %c0_i32_0 = arith.constant 0 : i32
    %c0_i32_1 = arith.constant 0 : i32
    return %arg0, %c0_i32, %c0_i32_0 : i32, i32, i32
  }
}

</mosaic_0001>

<bundles_post_ra>
// kernel: tpu_custom_call.1
= control target key start
LH: loop header
LB: loop body
LE: loop exit
PB: predicated region body
PF: predicated region fallthrough
CT: control target
= control target key end

     0   :  { %s4029_s0 = inlined_call_operand.vmem [shape: f32[2,8,16], index: 0, kind: input, shape index: {}]   ;;  %s4030_s1 = inlined_call_operand.vmem [shape: f32[8,32], index: 1, kind: input, shape index: {}]   ;;  %s4031_s2 = inlined_call_operand.hbm [shape: bf16[16,32], index: 2, kind: input, shape index: {}]   ;;  %s4032_s3 = inlined_call_operand.vmem [shape: f32[1,32], index: 3, kind: input, shape index: {}]   ;;  %s4033_s4 = inlined_call_operand.hbm [shape: f32[2,1,32], index: 4, kind: input, shape index: {}]   ;;  %s4034_s5 = inlined_call_operand.hbm [shape: f32[2,1,32], index: 5, kind: input, shape index: {}]   ;;  %s4035_s6 = inlined_call_operand.vmem [shape: bf16[2,32,96], index: 6, kind: input, shape index: {}]   ;;  %s4036_s7 = inlined_call_operand.hbm [shape: f32[2,1,96], index: 7, kind: input, shape index: {}]   ;;  %s4037_s8 = inlined_call_operand.hbm [shape: bf16[2,4,8], index: 8, kind: input, shape index: {}]   ;;  %s4038_s9 = inlined_call_operand.hbm [shape: bf16[2,4,8], index: 9, kind: input, shape index: {}]   ;;  %s4039_s10 = inlined_call_operand.vmem [shape: bf16[2,32,32], index: 10, kind: input, shape index: {}]   ;;  %s4040_s11 = inlined_call_operand.hbm [shape: f32[2,1,32], index: 11, kind: input, shape index: {}]   ;;  %s4041_s12 = inlined_call_operand.hbm [shape: f32[2,1,32], index: 12, kind: input, shape index: {}]   ;;  %s4042_s13 = inlined_call_operand.hbm [shape: f32[2,1,32], index: 13, kind: input, shape index: {}]   ;;  %s4043_s14 = inlined_call_operand.vmem [shape: bf16[2,32,64], index: 14, kind: input, shape index: {}]   ;;  %s4044_s15 = inlined_call_operand.vmem [shape: f32[2,1,64], index: 15, kind: input, shape index: {}]   ;;  %s4045_s16 = inlined_call_operand.vmem [shape: bf16[2,64,32], index: 16, kind: input, shape index: {}]   ;;  %s4046_s17 = inlined_call_operand.vmem [shape: f32[2,1,32], index: 17, kind: input, shape index: {}]   ;;  %s4047_s18 = inlined_call_operand.vmem [shape: f32[1,32], index: 18, kind: input, shape index: {}]   ;;  %s4048_s19 = inlined_call_operand.vmem [shape: f32[1,32], index: 19, kind: input, shape index: {}]   ;;  %s4049_s20 = inlined_call_operand.vmem [shape: f32[32,8], index: 20, kind: input, shape index: {}]   ;;  %s4050_s21 = inlined_call_operand.vmem [shape: f32[1,8], index: 21, kind: input, shape index: {}]   ;;  %s4051_s22 = inlined_call_operand.hbm [shape: f32[2,1,8], index: 22, kind: output, shape index: {}]  }
   0x1   :  { %4075 = sst [smem:[#allocation40_spill]] %s4029_s0 }
   0x2   :  { %4076 = sst [smem:[#allocation41_spill]] %s4030_s1 }
   0x3   :  { %4077 = sst [smem:[#allocation42_spill]] %s4031_s2 }
   0x4   :  { %4078 = sst [smem:[#allocation43_spill]] %s4032_s3 }
   0x5   :  { %4079 = sst [smem:[#allocation44_spill]] %s4033_s4 }
   0x6   :  { %4080 = sst [smem:[#allocation45_spill]] %s4034_s5 }
   0x7   :  { %4081 = sst [smem:[#allocation46_spill]] %s4035_s6 }
   0x8   :  { %4082 = sst [smem:[#allocation47_spill]] %s4036_s7 }
   0x9   :  { %4083 = sst [smem:[#allocation48_spill]] %s4037_s8 }
   0xa   :  { %4084 = sst [smem:[#allocation49_spill]] %s4038_s9 }
   0xb   :  { %4085 = sst [smem:[#allocation50_spill]] %s4039_s10 }
   0xc   :  { %4086 = sst [smem:[#allocation51_spill]] %s4040_s11 }
   0xd   :  { %4087 = sst [smem:[#allocation52_spill]] %s4041_s12 }
   0xe   :  { %4088 = sst [smem:[#allocation53_spill]] %s4042_s13 }
   0xf   :  { %4089 = sst [smem:[#allocation54_spill]] %s4043_s14 }
  0x10   :  { %4090 = sst [smem:[#allocation55_spill]] %s4044_s15 }
  0x11   :  { %4091 = sst [smem:[#allocation56_spill]] %s4045_s16 }
  0x12   :  { %4092 = sst [smem:[#allocation57_spill]] %s4046_s17 }
  0x13   :  { %4093 = sst [smem:[#allocation58_spill]] %s4047_s18 }
  0x14   :  { %4094 = sst [smem:[#allocation59_spill]] %s4048_s19 }
  0x15   :  { %4095 = sst [smem:[#allocation60_spill]] %s4049_s20 }
  0x16   :  { %4096 = sst [smem:[#allocation61_spill]] %s4050_s21 }
  0x17   :  { %4097 = sst [smem:[#allocation62_spill]] %s4051_s22 }
  0x18   :  { %27 = vsyncpa [#allocation5], 0 }
  0x19   :  { %28 = vsyncpa [#allocation8], 0 }
  0x1a   :  { %30 = vsyncpa [#allocation8 + $0x1], 0 }
  0x1b   :  { %31 = vsyncpa [#allocation11], 0 }
  0x1c   :  { %33 = vsyncpa [#allocation11 + $0x1], 0 }
  0x1d   :  { %34 = vsyncpa [#allocation14], 0 }
  0x1e   :  { %36 = vsyncpa [#allocation14 + $0x1], 0 }
  0x1f   :  { %37 = vsyncpa [#allocation17], 0 }
  0x20   :  { %39 = vsyncpa [#allocation17 + $0x1], 0 }
  0x21   :  { %40 = vsyncpa [#allocation6], 0 }
  0x22   :  { %42 = vsyncpa [#allocation6 + $0x1], 0  ;;  %s3459_s3 = smov 0   ;;  %s3461_s28 = smov 0  }
  0x23   :  { %s3463_s29 = smov 0   ;;  %s3465_s30 = smov 0  }
  0x24   :  { %s3467_s4 = smov 0   ;;  %s3469_s0 = smov 0  }
  0x25   :  { %s3471_s23 = smov 0   ;;  %s3473_s1 = smov 0  }
  0x26   :  { %s3475_s5 = smov 0   ;;  %s3477_s24 = smov 0  }
  0x27   :  { %s3479_s6 = smov 0  }
  0x28 LB: > { %4098 = sst [smem:[#allocation26_spill]] %s3276_s3  ;;  %s57_s25 = sadd.s32 1, %s3308_s5  ;;  %s3316_s6 = sphi %s3479_s6, %s48_s6   ;;  %s3312_s24 = sphi %s3477_s24, %s4182_s24   ;;  %s3308_s5 = sphi %s3475_s5, %s4181_s5   ;;  %s3304_s1 = sphi %s3473_s1, %s4180_s1   ;;  %s3300_s23 = sphi %s3471_s23, %s4179_s23   ;;  %s3296_s0 = sphi %s3469_s0, %s4178_s0   ;;  %s3292_s4 = sphi %s3467_s4, %s4177_s4   ;;  %s3288_s30 = sphi %s3465_s30, %s4176_s30   ;;  %s3284_s29 = sphi %s3463_s29, %s4175_s29   ;;  %s3280_s28 = sphi %s3461_s28, %s4184_s28   ;;  %s3276_s3 = sphi %s3459_s3, %s4183_s3  }
  0x29   : > { %4099 = sst [smem:[#allocation27_spill]] %s3284_s29  ;;  %s60_s26 = sadd.s32 1, %s3312_s24 }
  0x2a   : > { %4100 = sst [smem:[#allocation28_spill]] %s3292_s4  ;;  %p58_p0 = scmp.ge.s32.totalorder %s57_s25, 2 }
  0x2b   : > { %4101 = sst [smem:[#allocation29_spill]] %s3296_s0  ;;  %s156_s2 = sadd.s32 1, %s3296_s0 }
  0x2c   : > { %4102 = sst [smem:[#allocation30_spill]] %s3300_s23  ;;  %p163_p1 = scmp.ne.s32.totalorder %s3296_s0, %s3292_s4 }
  0x2d   : > { %4103 = sst [smem:[#allocation31_spill]] %s3304_s1  ;;  %p164_p2 = scmp.eq.s32.totalorder %s3316_s6, 0 }
  0x2e   : > { %4104 = sst [smem:[#allocation32_spill]] %s3308_s5  ;;  %s4186_s25 = smov (%p58_p0, %s57_s25), 0 }
  0x2f   : > { %4105 = sst [smem:[#allocation33_spill]] %s3312_s24  ;;  %s4188_s26 = smov (!%p58_p0, %s60_s26), %s3312_s24 }
  0x30   : > { %4106 = sst [smem:[#allocation34_spill]] %s3316_s6  ;;  %s153_s27 = ssub.s32 %s3308_s5, %s4186_s25 }
  0x31   : > { %4107 = sst [smem:[#allocation35_spill]] %s4186_s25  ;;  %p3525_p3 = por %p164_p2, %p163_p1 }
  0x32   : > { %p62_p4 = scmp.ge.s32.totalorder %s4188_s26, 2  ;;  %p154_p5 = scmp.eq.s32.totalorder %s153_s27, 0 }
  0x33   : > { %p2787_p6 = scmp.lt.s32.totalorder %s3316_s6, 4  ;;  %s3536_s19 = sand.u32 1, %s3316_s6  }
  0x34   : > { %s4190_s26 = smov (%p62_p4, %s4188_s26), 0  ;;  %s3539_s18 = sand.u32 1, %s3296_s0  }
  0x35   : > { %4109 = sst [smem:[#allocation36_spill]] %s4190_s26  ;;  %s3542_s25 = sshll.u32 %s3308_s5, 4 }
  0x36   : > { %s3533_s21 = scalar_select %p154_p5, %s3296_s0, %s156_s2  }
  0x37   : > { %s682_s20 = scalar_lea.vmem [#allocation7], %s3539_s18  ;;  %s4111_s15 = sld [smem:[#allocation44_spill]] }
  0x38   : > { %4110 = sst [smem:[#allocation37_spill]] %s3533_s21  ;;  %s689_s16 = sshll.u32 %s682_s20, 4  ;;  %s690_s16 = int_to_ptr.vmem [resolvable:$true] %s689_s16 }
  0x39   : > { %p3551_p7 = pnand %p2787_p6, %p3525_p3  ;;  %s4113_s7 = sld [smem:[#allocation47_spill]] }
  0x3a   : > { %s724_s23 = scalar_lea.vmem [#allocation10], %s3539_s18  ;;  %s4059_s13 = scalar_lea.sflag [#allocation8], %s3536_s19 }
  0x3b   : > { %s731_s1 = sshll.u32 %s724_s23, 4  ;;  %p3563_p8 = pneg %p3551_p7  ;;  %s732_s1 = int_to_ptr.vmem [resolvable:$true] %s731_s1 }
  0x3c   : > { %s3318_s17 = smov [#allocation7]  }
  0x3d   : > { %s687_s14 = scalar_lea.hbm %s4111_s15, %s3542_s25  ;;  %s2943_s15 = scalar_lea.vmem %s690_s16, 16 }
  0x3e   : > { %p2944_p9 = scmp.ne.s32.totalorder %s690_s16, %s2943_s15  ;;  %s2948_s22 = sshll.u32 %s3318_s17, 4  ;;  %s2949_s22 = int_to_ptr.vmem [resolvable:$false] %s2948_s22 }
  0x3f   : > { %s729_s10 = scalar_lea.hbm %s4113_s7, %s3542_s25  ;;  %s2950_s21 = scalar_lea.vmem %s2949_s22, 32 }
  0x40   : > { %p2946_p10 = pnand %p2944_p9, %p3563_p8  ;;  %p2951_p12 = scmp.lt.s32.totalorder %s690_s16, %s2949_s22 }
  0x41   : > { %p2952_p13 = scmp.lt.s32.totalorder %s2950_s21, %s2943_s15 }
  0x42   : > { %p2947_p11 = pneg %p2946_p10 }
  0x43   : > { %p2953_p0 = por %p2952_p13, %p2951_p12 }
  0x45   : > { %p2954_p1 = pnand %p2953_p0, %p2947_p11 }
  0x47   : > { %2957 = shalt.err (!%p2954_p1)
}
  0x48   : > { %2760 = dma.hbm_to_vmem [thread:$0]  (!%p3551_p7), %s687_s14, 16, %s690_s16, %s4059_s13  }
  0x49   : > { %s4062_s23 = scalar_lea.sflag [#allocation11], %s3536_s19  ;;  %s2971_s27 = scalar_lea.vmem %s732_s1, 16 }
  0x4a   : > { %p2972_p2 = scmp.ne.s32.totalorder %s732_s1, %s2971_s27  ;;  %s3319_s15 = smov [#allocation10]  }
  0x4b   : > { %s2976_s17 = sshll.u32 %s3319_s15, 4  ;;  %s2977_s17 = int_to_ptr.vmem [resolvable:$false] %s2976_s17 }
  0x4c   : > { %p2974_p3 = pnand %p2972_p2, %p3563_p8  ;;  %s2978_s22 = scalar_lea.vmem %s2977_s17, 32 }
  0x4d   : > { %p2979_p5 = scmp.lt.s32.totalorder %s732_s1, %s2977_s17  ;;  %p2980_p6 = scmp.lt.s32.totalorder %s2978_s22, %s2971_s27 }
  0x4e   : > { %p2975_p4 = pneg %p2974_p3 }
  0x4f   : > { %p2981_p9 = por %p2980_p6, %p2979_p5 }
  0x51   : > { %p2982_p10 = pnand %p2981_p9, %p2975_p4 }
  0x53   : > { %2985 = shalt.err (!%p2982_p10)
}
  0x54   : > { %2766 = dma.hbm_to_vmem [thread:$0]  (!%p3551_p7), %s729_s10, 16, %s732_s1, %s4062_s23  }
  0x55   : > { %s2511_s21 = sshll.u32 %s3308_s5, 5  ;;  %s4115_s8 = sld [smem:[#allocation48_spill]] }
  0x56   : > { %s4116_s9 = sld [smem:[#allocation49_spill]]  ;;  %s4117_s11 = sshll.u32 %s3539_s18, 1 }
  0x57   : > { %s760_s3 = scalar_lea.vmem [#allocation13], %s4117_s11  ;;  %s4061_s16 = scalar_lea.sflag [#allocation14], %s3536_s19 }
  0x58   : > { %s767_s14 = sshll.u32 %s760_s3, 4  ;;  %s3320_s10 = smov [#allocation13]   ;;  %s768_s14 = int_to_ptr.vmem [resolvable:$true] %s767_s14 }
  0x59   : > { %s2999_s7 = scalar_lea.vmem %s768_s14, 32  ;;  %s3004_s1 = sshll.u32 %s3320_s10, 4  ;;  %s3005_s1 = int_to_ptr.vmem [resolvable:$false] %s3004_s1 }
  0x5a   : > { %p3000_p11 = scmp.ne.s32.totalorder %s768_s14, %s2999_s7  ;;  %s3006_s15 = scalar_lea.vmem %s3005_s1, 64 }
  0x5b   : > { %s3590_s17 = scalar_lea.hbm %s4115_s8, %s2511_s21  ;;  %p3007_p0 = scmp.lt.s32.totalorder %s768_s14, %s3005_s1 }
  0x5c   : > { %s765_s0 = scalar_lea.hbm %s4116_s9, %s2511_s21  ;;  %p3002_p12 = pnand %p3000_p11, %p3563_p8 }
  0x5d   : > { %p3008_p1 = scmp.lt.s32.totalorder %s3006_s15, %s2999_s7 }
  0x5e   : > { %p3003_p13 = pneg %p3002_p12 }
  0x5f   : > { %p3009_p2 = por %p3008_p1, %p3007_p0 }
  0x61   : > { %p3010_p3 = pnand %p3009_p2, %p3003_p13 }
  0x63   : > { %3013 = shalt.err (!%p3010_p3)
}
  0x64   : > { %2772 = dma.hbm_to_vmem [thread:$0]  (!%p3551_p7), %s765_s0, 32, %s768_s14, %s4061_s16  }
  0x65   : > { %s4118_s12 = sld [smem:[#allocation52_spill]]  ;;  %s802_s21 = scalar_lea.vmem [#allocation16], %s3539_s18 }
  0x66   : > { %s809_s27 = sshll.u32 %s802_s21, 4  ;;  %s4060_s7 = scalar_lea.sflag [#allocation17], %s3536_s19  ;;  %s810_s27 = int_to_ptr.vmem [resolvable:$true] %s809_s27 }
  0x67   : > { %s3027_s22 = scalar_lea.vmem %s810_s27, 16  ;;  %s3321_s10 = smov [#allocation16]  }
  0x68   : > { %p3028_p4 = scmp.ne.s32.totalorder %s810_s27, %s3027_s22  ;;  %s3032_s1 = sshll.u32 %s3321_s10, 4  ;;  %s3033_s1 = int_to_ptr.vmem [resolvable:$false] %s3032_s1 }
  0x69   : > { %s3034_s15 = scalar_lea.vmem %s3033_s1, 32  ;;  %p3035_p9 = scmp.lt.s32.totalorder %s810_s27, %s3033_s1 }
  0x6a   : > { %p3030_p5 = pnand %p3028_p4, %p3563_p8  ;;  %p3036_p10 = scmp.lt.s32.totalorder %s3034_s15, %s3027_s22 }
  0x6b   : > { %s807_s3 = scalar_lea.hbm %s4118_s12, %s3542_s25 }
  0x6c   : > { %p3031_p6 = pneg %p3030_p5  ;;  %p3037_p11 = por %p3036_p10, %p3035_p9 }
  0x6e   : > { %p3038_p12 = pnand %p3037_p11, %p3031_p6 }
  0x70   : > { %3041 = shalt.err (!%p3038_p12)
}
  0x71   : > { %s4119_s0 = sld [smem:[#allocation26_spill]]  ;;  %s3617_s14 = sadd.s32 4294967295, %s3316_s6  }
  0x72   : > { %2778 = dma.hbm_to_vmem [thread:$0]  (!%p3551_p7), %s807_s3, 16, %s810_s27, %s4060_s7  }
  0x73   : > { %s2503_s11 = sadd.s32 4294967294, %s3316_s6   ;;  %p169_p13 = scmp.ne.s32.totalorder %s3292_s4, %s3288_s30 }
  0x74   : > { %p4063_p0 = scmp.eq.s32.totalorder %s3617_s14, 0  ;;  %s601_s13 = ssub.s32 %s3312_s24, %s4190_s26 }
  0x75   : > { %p602_p1 = scmp.eq.s32.totalorder %s601_s13, 0  ;;  %s604_s21 = sadd.s32 1, %s3284_s29 }
  0x76   : > { %p3628_p2 = por %p4063_p0, %p169_p13  ;;  %p614_p3 = scmp.ne.s32.totalorder %s3284_s29, %s3280_s28 }
  0x77   : > { %s3635_s3 = scalar_select %p602_p1, %s3284_s29, %s604_s21  }
  0x78   : > { %s4120_s22 = scalar_select %p3628_p2, 1, 0 }
  0x79   : > { %4121 = sst [smem:[#allocation38_spill]] %s3635_s3  ;;  %p615_p4 = scmp.eq.s32.totalorder %s3617_s14, 3 }
  0x7a   : > { %p620_p5 = scmp.ne.s32.totalorder %s3280_s28, %s4119_s0  ;;  %p621_p6 = scmp.eq.s32.totalorder %s2503_s11, 3 }
  0x7b   : > { %p2504_p9 = scmp.ge.s32.totalorder %s3316_s6, 1  ;;  %p3641_p10 = por %p615_p4, %p614_p3 }
  0x7c   : > { %p628_p11 = scmp.lt.s32.totalorder %s3316_s6, 5  ;;  %p3646_p12 = por %p621_p6, %p620_p5 }
  0x7d   : > { %s4122_s30 = scalar_select %p3641_p10, 1, 0 }
  0x7e   : > { %s4123_s27 = scalar_select %p3646_p12, 1, 0 }
  0x7f   : > { %p3650_p13 = pnand %p2504_p9, %p628_p11  ;;  %s3322_s1 = smov [#allocation4]  }
  0x80   : > { %4124 = sst [smem:[#allocation39_spill]] %s4123_s27  ;;  %s643_s15 = sshll.u32 %s3322_s1, 4  ;;  %s644_s15 = int_to_ptr.vmem [resolvable:$true] %s643_s15 }
  0x81   : > { %p2753_p1 = pneg %p3650_p13  ;;  %s4127_s21 = sld [smem:[#allocation45_spill]] }
  0x82   : > { %s699_s16 = scalar_lea.vmem [#allocation9], %s3539_s18  ;;  %s4128_s8 = sshll.u32 %s3539_s18, 1 }
  0x83   : > { %p3658_p3 = pnand %p2753_p1, %p4063_p0  ;;  %s706_s23 = sshll.u32 %s699_s16, 4  ;;  %s707_s23 = int_to_ptr.vmem [resolvable:$true] %s706_s23 }
  0x84   : > { %s3669_s9 = scalar_lea.vmem [#allocation12], %s4128_s8  ;;  %s3053_s12 = scalar_lea.vmem %s644_s15, 128 }
  0x85   : > { %p3044_p4 = pneg %p3658_p3  ;;  %p3054_p5 = scmp.ne.s32.totalorder %s644_s15, %s3053_s12 }
  0x86   : > { %p3061_p11 = scmp.lt.s32.totalorder %s644_s15, %s644_s15  ;;  %p3062_p1 = scmp.lt.s32.totalorder %s3053_s12, %s3053_s12 }
  0x87   : > { %p3056_p6 = pnand %p3054_p5, %p3044_p4 }
  0x88   : > { %p3063_p0 = por %p3062_p1, %p3061_p11 }
  0x89   : > { %p3057_p9 = pneg %p3056_p6 }
  0x8b   : > { %p3064_p12 = pnand %p3063_p0, %p3057_p9 }
  0x8d   : > { %3067 = shalt.err (!%p3064_p12)
}
  0x8e   : > { %s3323_s11 = smov 64   ;;  %s3324_s16 = smov 4  }
  0x8f   : > { %s4129_s1 = sld [smem:[#allocation42_spill]]  ;;  %s3081_s7 = scalar_lea.vmem %s707_s23, 16 }
  0x90   : > { %p3082_p10 = scmp.ne.s32.totalorder %s707_s23, %s3081_s7  ;;  %s3325_s26 = smov [#allocation9]  }
  0x91   : > { %s3086_s24 = sshll.u32 %s3325_s26, 4  ;;  %s3087_s24 = int_to_ptr.vmem [resolvable:$false] %s3086_s24 }
  0x92   : > { %p3084_p2 = pnand %p3082_p10, %p3563_p8  ;;  %s3088_s12 = scalar_lea.vmem %s3087_s24, 32 }
  0x93   : > { %p3089_p0 = scmp.lt.s32.totalorder %s707_s23, %s3087_s24  ;;  %p3090_p12 = scmp.lt.s32.totalorder %s3088_s12, %s3081_s7 }
  0x94   : > { %p3085_p4 = pneg %p3084_p2 }
  0x95   : > { %2756 = dma.hbm_to_vmem [thread:$0]  (!%p3658_p3), %s4129_s1, 128, %s644_s15, [#allocation5], %s3323_s11, %s3323_s11, %s3324_s16  }
  0x96   : > { %p3091_p5 = por %p3090_p12, %p3089_p0 }
  0x98   : > { %p3092_p6 = pnand %p3091_p5, %p3085_p4 }
  0x9a   : > { %3095 = shalt.err (!%p3092_p6)
}
  0x9b   : > { %s4130_s0 = scalar_lea.sflag [#allocation8], %s3536_s19  ;;  %s4131_s1 = scalar_lea.hbm %s4127_s21, %s3542_s25 }
  0x9c   : > { %2763 = dma.hbm_to_vmem [thread:$0]  (!%p3551_p7), %s4131_s1, 16, %s707_s23, %s4130_s0  }
  0x9d   : > { %s4132_s26 = sshll.u32 %s3669_s9, 4  ;;  %s3326_s24 = smov [#allocation12]   ;;  %s750_s26 = int_to_ptr.vmem [resolvable:$true] %s4132_s26 }
  0x9e   : > { %s3109_s11 = scalar_lea.vmem %s750_s26, 32  ;;  %s3114_s7 = sshll.u32 %s3326_s24, 4  ;;  %s3115_s7 = int_to_ptr.vmem [resolvable:$false] %s3114_s7 }
  0x9f   : > { %p3110_p2 = scmp.ne.s32.totalorder %s750_s26, %s3109_s11  ;;  %s3116_s16 = scalar_lea.vmem %s3115_s7, 64 }
  0xa0   : > { %p3117_p9 = scmp.lt.s32.totalorder %s750_s26, %s3115_s7  ;;  %p3118_p11 = scmp.lt.s32.totalorder %s3116_s16, %s3109_s11 }
  0xa1   : > { %p3112_p10 = pnand %p3110_p2, %p3563_p8 }
  0xa2   : > { %p3119_p1 = por %p3118_p11, %p3117_p9 }
  0xa3   : > { %p3113_p3 = pneg %p3112_p10 }
  0xa5   : > { %p3120_p4 = pnand %p3119_p1, %p3113_p3 }
  0xa7   : > { %3123 = shalt.err (!%p3120_p4)
}
  0xa8   : > { %s4133_s23 = scalar_lea.sflag [#allocation11], %s3536_s19  ;;  %s4134_s12 = sld [smem:[#allocation51_spill]] }
  0xa9   : > { %2769 = dma.hbm_to_vmem [thread:$0]  (!%p3551_p7), %s3590_s17, 32, %s750_s26, %s4133_s23  }
  0xaa   : > { %s785_s8 = scalar_lea.vmem [#allocation15], %s3539_s18  ;;  %s3327_s11 = smov [#allocation15]  }
  0xab   : > { %s792_s15 = sshll.u32 %s785_s8, 4  ;;  %s3142_s24 = sshll.u32 %s3327_s11, 4  ;;  %s793_s15 = int_to_ptr.vmem [resolvable:$true] %s792_s15  ;;  %s3143_s24 = int_to_ptr.vmem [resolvable:$false] %s3142_s24 }
  0xac   : > { %s3137_s1 = scalar_lea.vmem %s793_s15, 16  ;;  %s3144_s7 = scalar_lea.vmem %s3143_s24, 32 }
  0xad   : > { %p3138_p0 = scmp.ne.s32.totalorder %s793_s15, %s3137_s1  ;;  %p3145_p6 = scmp.lt.s32.totalorder %s793_s15, %s3143_s24 }
  0xae   : > { %s790_s0 = scalar_lea.hbm %s4134_s12, %s3542_s25  ;;  %p3146_p2 = scmp.lt.s32.totalorder %s3144_s7, %s3137_s1 }
  0xaf   : > { %p3140_p12 = pnand %p3138_p0, %p3563_p8 }
  0xb0   : > { %p3147_p10 = por %p3146_p2, %p3145_p6 }
  0xb1   : > { %p3141_p5 = pneg %p3140_p12 }
  0xb3   : > { %p3148_p3 = pnand %p3147_p10, %p3141_p5 }
  0xb5   : > { %3151 = shalt.err (!%p3148_p3)
}
  0xb6   : > { %s4135_s17 = scalar_lea.sflag [#allocation14], %s3536_s19  ;;  %s4136_s23 = sld [smem:[#allocation53_spill]] }
  0xb7   : > { %2775 = dma.hbm_to_vmem [thread:$0]  (!%p3551_p7), %s790_s0, 16, %s793_s15, %s4135_s17  }
  0xb8   : > { %s819_s13 = scalar_lea.vmem [#allocation18], %s3539_s18  ;;  %s3328_s1 = smov [#allocation18]  }
  0xb9   : > { %s826_s12 = sshll.u32 %s819_s13, 4  ;;  %s3170_s11 = sshll.u32 %s3328_s1, 4  ;;  %s827_s12 = int_to_ptr.vmem [resolvable:$true] %s826_s12  ;;  %s3171_s11 = int_to_ptr.vmem [resolvable:$false] %s3170_s11 }
  0xba   : > { %s3165_s8 = scalar_lea.vmem %s827_s12, 16  ;;  %s3172_s24 = scalar_lea.vmem %s3171_s11, 32 }
  0xbb   : > { %p3166_p9 = scmp.ne.s32.totalorder %s827_s12, %s3165_s8  ;;  %p3173_p4 = scmp.lt.s32.totalorder %s827_s12, %s3171_s11 }
  0xbc   : > { %s824_s9 = scalar_lea.hbm %s4136_s23, %s3542_s25  ;;  %p3174_p0 = scmp.lt.s32.totalorder %s3172_s24, %s3165_s8 }
  0xbd   : > { %p3168_p11 = pnand %p3166_p9, %p3563_p8 }
  0xbe   : > { %p3175_p12 = por %p3174_p0, %p3173_p4 }
  0xbf   : > { %p3169_p1 = pneg %p3168_p11 }
  0xc1   : > { %p3176_p5 = pnand %p3175_p12, %p3169_p1 }
  0xc3   : > { %3179 = shalt.err (!%p3176_p5)
}
  0xc4   : > { %s4137_s18 = scalar_lea.sflag [#allocation17], %s3536_s19  ;;  %863 = sbr.rel (%p3650_p13) target bundleno = 3736 (0xe98), region = 108 }
  0xc5   : > { %2781 = dma.hbm_to_vmem [thread:$0]  (!%p3551_p7), %s824_s9, 16, %s827_s12, %s4137_s18  }
  0xc6   : > { %p4138_p8 = scmp.eq.s32.totalorder (!%p3650_p13), %s3617_s14, 0 }
  0xc9   : > { %3251 = dma.done.wait (%p4138_p8), [#allocation5], 128   ;;  %p4139_p6 = pmov %p4138_p8 }
  0xca   : > { %s869_s25 = sand.u32 1, %s3617_s14   ;;  %s3729_s20 = sand.u32 1, %s3292_s4  }
  0xcb   : > { %3253 = vsyncadd (%p4139_p6), [#allocation5], 4294967168  ;;  %s870_s2 = scalar_lea.sflag [#allocation8], %s869_s25  ;;  %p4140_p2 = scmp.ne.s32.totalorder %s4120_s22, 0 }
  0xcd   : > { %3255 = dma.done.wait (%p4140_p2), %s870_s2, 32  }
  0xce   : > { %3257 = vsyncadd (%p4140_p2), %s870_s2, 4294967264  ;;  %s886_s10 = scalar_lea.sflag [#allocation11], %s869_s25 }
  0xcf   : > { %3259 = dma.done.wait (%p4140_p2), %s886_s10, 48  }
  0xd0   : > { %3261 = vsyncadd (%p4140_p2), %s886_s10, 4294967248  ;;  %s2519_s14 = sshll.u32 %s3729_s20, 1  ;;  %s903_s17 = scalar_lea.sflag [#allocation14], %s869_s25 }
  0xd1   : > { %s3743_s7 = scalar_lea.vmem [#allocation12], %s2519_s14  ;;  %s3745_s26 = scalar_lea.vmem [#allocation13], %s2519_s14 }
  0xd2   : > { %3263 = dma.done.wait (%p4140_p2), %s903_s17, 48  }
  0xd3   : > { %3265 = vsyncadd (%p4140_p2), %s903_s17, 4294967248  ;;  %s920_s23 = scalar_lea.sflag [#allocation17], %s869_s25 }
  0xd4   : > { %3267 = dma.done.wait (%p4140_p2), %s920_s23, 32  }
  0xd5   : > { %3269 = vsyncadd (%p4140_p2), %s920_s23, 4294967264  ;;  %s4141_s13 = sld [smem:[#allocation31_spill]]  ;;  %s4150_s9 = sand.u32 1, %s3280_s28  }
  0xd6   : > { %s4142_s12 = sld [smem:[#allocation30_spill]]  ;;  %s3800_s6 = scalar_lea.vmem [#allocation19], %s4150_s9 }
  0xd7   : > { %s4143_s18 = sld [smem:[#allocation40_spill]] }
  0xd8   : > { %s4144_s17 = sld [smem:[#allocation46_spill]] }
  0xd9   : > { %s4145_s15 = sld [smem:[#allocation50_spill]] }
  0xda   : > { %s4146_s21 = sld [smem:[#allocation54_spill]] }
  0xdb   : > { %p1049_p7 = scmp.lt.s32.totalorder %s4141_s13, 1  ;;  %s4147_s22 = sld [smem:[#allocation55_spill]] }
  0xdc   : > { %p1053_p13 = scmp.lt.s32.totalorder %s4142_s12, 1  ;;  %s4148_s10 = sld [smem:[#allocation57_spill]] }
  0xdd   : > { %s4192_s13 = smov (!%p1049_p7, %s4141_s13), 1  ;;  %s4149_s27 = sld [smem:[#allocation56_spill]] }
  0xde   : > { %s3762_s1 = scalar_select %p1053_p13, %s4142_s12, 1 }
  0xdf   : > { %s2521_s11 = sshll.u32 %s4192_s13, 3  ;;  %p2530_p10 = scmp.ne.s32.totalorder %s4142_s12, 0 }
  0xe0   : > { %s1052_s25 = scalar_lea.vmem %s4143_s18, %s2521_s11  ;;  %s2573_s2 = sshll.u32 %s3762_s1, 4 }
  0xe1   : > { %s3771_s23 = scalar_lea.vmem %s4144_s17, %s2573_s2  ;;  %s3776_s19 = scalar_lea.vmem %s4145_s15, %s2573_s2 }
  0xe2   : > { %s3781_s5 = scalar_lea.vmem %s4146_s21, %s2573_s2  ;;  %s1070_s11 = scalar_lea.vmem %s4147_s22, %s3762_s1 }
  0xe3   : > { %s2576_s24 = sshll.u32 %s3762_s1, 5  ;;  %s1078_s14 = scalar_lea.vmem %s4148_s10, %s3762_s1 }
  0xe4   : > { %s3795_s16 = scalar_lea.vmem %s4149_s27, %s2576_s24  ;;  %s930_s15 = scalar_lea.vmem [#allocation18], %s3729_s20 }
  0xe5   : > { %1083 = sbr.rel (%p2530_p10) target bundleno = 438 (0x1b6), region = 148  ;;  %s4151_s3 = sld [smem:[#allocation43_spill]] (!%p2530_p10) }
  0xe6   : > { %s4152_s0 = sld [smem:[#allocation41_spill]] (!%p2530_p10) }
  0xea   : > { %v2895_v0 = vld [vmem:[#allocation4] sm:$0xff]   ;;  %v3329_v1 = vmov 0.0   ;;  %v1084_v2 = vld [vmem:[%s1052_s25] sm:$0xff]  ;;  %vm3330_vm0 = vmmov 0   ;;  %vm1101_vm1 = vcmask 130048   ;;  %vm1147_vm2 = vcmask 261120  }
  0xeb   : > { %2618 = vmatprep.subr.bf16.mxu0 %v3329_v1  ;;  %2620 = vmatprep.mubr.msk.bf16.mxu0 %vm3330_vm0, %v3329_v1  ;;  %v1085_v3 = vpack.c.bf16 %v1084_v2, %v1084_v2  ;;  %v2531_v4 = vld [vmem:[%s4151_s3] ss:$0 sm:$0xff] }
  0xec   : > { %2619 = vmatpush3.bf16.msra.mxu0 %v2895_v0  ;;  %v1145_v6 = vld [vmem:[%s4152_s0] sm:$0xff] }
  0xef   : > { %2621 = vmatmul.mubr.msk.bf16.vlgmr.msra.gmra.mxu0 %vm1101_vm1, %v1085_v3 }
 0x1af   : > { %v1139_v5 = vpop.f32.mrf.mxu0 }
 0x1b0   : > { %v1140_v7 = vadd.f32 %v2531_v4, %v1139_v5 }
 0x1b1   : > { %v2622_v8 = vpop.f32.mrf.mxu0 }
 0x1b2   : > { %v1146_v9 = vadd.f32 %v1145_v6, %v1140_v7 }
 0x1b3   : > { %v1142_v10 = vpop.f32.mrf.mxu0 }
 0x1b4   : > { %1148 = vst.msk [vmem:[#allocation2] sm:$0xff] %vm1147_vm2, %v1146_v9 }
 0x1b5   : > { %v2623_v11 = vpop.f32.mrf.mxu0 }
 0x1b6 PF: > { %vm1152_vm3 = vcmask 261120   ;;  %v2896_v19 = vld [vmem:[%s3771_s23 + $0x8] sm:$0xff]   ;;  %v3331_v20 = vmov 0.0   ;;  %vm3332_vm4 = vmmov 0   ;;  %v2897_v21 = vld [vmem:[%s3771_s23] sm:$0xff]   ;;  %s4153_s12 = scalar_lea.vmem [#allocation7], %s3729_s20 }
 0x1b7   : > { %2624 = vmatprep.subr.bf16.mxu0 %v3331_v20  ;;  %2628 = vmatprep.mubr.msk.bf16.mxu0 %vm3332_vm4, %v3331_v20  ;;  %v2534_v26 = vld [vmem:[%s4153_s12] ss:$0 sm:$0xff]  ;;  %s4154_s8 = scalar_lea.vmem [#allocation9], %s3729_s20  ;;  %s4155_s25 = scalar_lea.vmem [#allocation10], %s3729_s20  ;;  %vm1257_vm5 = vcmask 1043456   ;;  %vm1253_vm6 = vcmask 64512  }
 0x1b8   : > { %2625 = vmatpush3.bf16.msra.mxu0 %v2896_v19  ;;  %2632 = vmatprep.subr.bf16.mxu1 %v3331_v20  ;;  %v2535_v28 = vld [vmem:[%s4154_s8] ss:$0 sm:$0xff]  ;;  %s3333_s2 = smov 96   ;;  %s3334_s23 = smov 64   ;;  %v1302_v44 = vld [vmem:[%s3745_s26] sm:$0x3] }
 0x1b9   : > { %2626 = vmatprep.subr.bf16.mxu0 %v3331_v20  ;;  %2634 = vmatprep.mubr.msk.bf16.mxu1 %vm3332_vm4, %v3331_v20  ;;  %v2536_v32 = vld [vmem:[%s4155_s25] ss:$0 sm:$0xff]  ;;  %s3335_s13 = smov 120   ;;  %s3337_s26 = smov 104   ;;  %vm1399_vm7 = vcmask 31744   ;;  %vm1415_vm8 = vcmask 1041408  }
 0x1ba   : > { %v1249_v41 = vld [vmem:[%s3743_s7] sm:$0x3]  ;;  %s3336_s7 = smov 112   ;;  %s3338_s22 = smov 8   ;;  %vm1577_vm9 = vcmask 130112   ;;  %vm1694_vm10 = vcmask 195712  }
 0x1bb   : > { %v3809_v12 = vld [vmem:[#allocation2] sm:$0xff]  ;;  %s3339_s24 = smov 16   ;;  %s3340_s18 = smov 24   ;;  %vm1811_vm11 = vcmask 261312   ;;  %vm2023_vm12 = vcmask 523264  }
 0x1bc   : > { %v1153_v13 = vsel %vm1152_vm3, %v3809_v12, 0.0  ;;  %2627 = vmatpush3.bf16.msra.mxu0 %v2897_v21  ;;  %s4157_s10 = scalar_lea.vmem [#allocation16], %s3729_s20 }
 0x1bd   : > { %1154 = vadd.xlane.f32.xlu0 %v1153_v13  ;;  %2656 = vmatprep.subr.bf16.mxu0 %v3331_v20 }
 0x246   : > { %v1155_v14 = vpop.xlane.xlu0 %1154 }
 0x247   : > { %v1157_v15 = vmul.f32 0.03125, %v1155_v14 }
 0x249   : > { %v1158_v16 = vsub.f32 %v3809_v12, %v1157_v15 }
 0x24b   : > { %v1159_v17 = vmul.f32 %v1158_v16, %v1158_v16 }
 0x24d   : > { %v1160_v18 = vsel %vm1152_vm3, %v1159_v17, 0.0 }
 0x24e   : > { %1161 = vadd.xlane.f32.xlu0 %v1160_v18 }
 0x2d7   : > { %v1162_v22 = vpop.xlane.xlu0 %1161 }
 0x2d8   : > { %v1163_v23 = vmul.f32 0.03125, %v1162_v22 }
 0x2da   : > { %v1164_v24 = vadd.f32 1e-05, %v1163_v23 }
 0x2dc   : > { %2906 = vrsqrt.f32 %v1164_v24 }
 0x2e9   : > { %v2907_v25 = vpop.eup %2906 }
 0x2ea   : > { %v1166_v27 = vmul.f32 %v2907_v25, %v1158_v16 }
 0x2ec   : > { %v1173_v29 = vmul.f32 %v2534_v26, %v1166_v27 }
 0x2ee   : > { %v1180_v30 = vadd.f32 %v2535_v28, %v1173_v29 }
 0x2f0   : > { %v1181_v31 = vpack.c.bf16 %v1180_v30, %v1180_v30 }
 0x2f2   : > { %2629 = vmatmul.mubr.msk.bf16.vlgmr.msra.gmra.mxu0 %vm1152_vm3, %v1181_v31 }
 0x2f3   : > { %2658 = vmatprep.mubr.msk.bf16.mxu0 %vm3332_vm4, %v3331_v20 }
 0x3b2   : > { %v1242_v33 = vpop.f32.mrf.mxu0 }
 0x3b3   : > { %v1243_v34 = vadd.f32 %v2536_v32, %v1242_v33 }
 0x3b4   : > { %v2630_v35 = vpop.f32.mrf.mxu0 }
 0x3b5   : > { %v1248_v36 = vpack.c.bf16 %v1243_v34, %v1243_v34 }
 0x3b6   : > { %v1245_v37 = vpop.f32.mrf.mxu0 }
 0x3b7   : > { %1251 = vrot.lane.b32.xlu1 %v1248_v36, %s3333_s2 }
 0x3b8   : > { %v2631_v38 = vpop.f32.mrf.mxu0 }
 0x3bb   : > { %1303 = vrot.lane.b32.xlu1 %v1248_v36, %s3334_s23 }
 0x3bf   : > { %1460 = vrot.lane.b32.xlu1 %v1248_v36, %s3335_s13 }
 0x429   : > { %v1252_v39 = vpop.permute.xlu1 %1251 }
 0x42a   : > { %v1259_v40 = vsel %vm1257_vm5, %v1252_v39, 0 }
 0x42b   : > { %2633 = vmatpush3.bf16.msra.mxu1 %v1259_v40 }
 0x42c   : > { %2638 = vmatprep.subr.bf16.mxu1 %v3331_v20 }
 0x42d   : > { %v1304_v42 = vpop.permute.xlu1 %1303 }
 0x42e   : > { %v1309_v43 = vsel %vm1257_vm5, %v1304_v42, 0  ;;  %2635 = vmatmul.mubr.msk.bf16.vlgmr.msra.gmra.mxu1 %vm1253_vm6, %v1249_v41 }
 0x42f   : > { %2639 = vmatpush3.bf16.msra.mxu1 %v1309_v43  ;;  %2640 = vmatprep.mubr.msk.bf16.mxu1 %vm3332_vm4, %v3331_v20 }
 0x430   : > { %2644 = vmatprep.subr.bf16.mxu1 %v3331_v20 }
 0x431   : > { %v1461_v55 = vpop.permute.xlu1 %1460 }
 0x436   : > { %2641 = vmatmul.mubr.msk.bf16.vlgmr.msra.gmra.mxu1 %vm1253_vm6, %v1302_v44 }
 0x437   : > { %2646 = vmatprep.mubr.msk.bf16.mxu1 %vm3332_vm4, %v3331_v20 }
 0x4ee   : > { %v1295_v45 = vpop.f32.mrf.mxu1 }
 0x4ef   : > { %v1301_v46 = vpack.c.bf16 %v1295_v45, %v1295_v45 }
 0x4f0   : > { %v2636_v47 = vpop.f32.mrf.mxu1 }
 0x4f1   : > { %1581 = vrot.lane.b32.xlu1 %v1301_v46, %s3336_s7  ;;  %1463 = vrot.lane.b32.xlu0 %v1301_v46, %s3335_s13  ;;  %v1356_v48 = vsel %vm1253_vm6, %v1301_v46, 0 }
 0x4f2   : > { %v1298_v49 = vpop.f32.mrf.mxu1  ;;  %2645 = vmatpush3.bf16.xpose.msra.mxu1 %v1356_v48 }
 0x4f3   : > { %2650 = vmatprep.subr.bf16.mxu1 %v3331_v20 }
 0x4f4   : > { %v2637_v50 = vpop.f32.mrf.mxu1 }
 0x4f5   : > { %1579 = vrot.lane.b32.xlu1 %v1248_v36, %s3336_s7 }
 0x4f6   : > { %v1345_v51 = vpop.f32.mrf.mxu1 }
 0x4f7   : > { %v3871_v5 = vpack.c.bf16 %v1345_v51, %v1345_v51 }
 0x4f8   : > { %v2642_v52 = vpop.f32.mrf.mxu1 }
 0x4f9   : > { %1698 = vrot.lane.b32.xlu1 %v1301_v46, %s3337_s26  ;;  %2647 = vmatmul.mubr.msk.bf16.vlgmr.msra.gmra.mxu1 %vm1253_vm6, %v1248_v36  ;;  %v1417_v7 = vsel %vm1415_vm8, %v3871_v5, 0 }
 0x4fa   : > { %2652 = vmatprep.mubr.msk.bf16.mxu1 %vm3332_vm4, %v3331_v20  ;;  %v1348_v53 = vpop.f32.mrf.mxu1  ;;  %2651 = vmatpush3.bf16.msra.mxu1 %v1417_v7 }
 0x4fb   : > { %2662 = vmatprep.subr.bf16.mxu1 %v3331_v20 }
 0x4fc   : > { %v2643_v54 = vpop.f32.mrf.mxu1 }
 0x4fd   : > { %1696 = vrot.lane.b32.xlu1 %v1248_v36, %s3337_s26 }
 0x563   : > { %v1464_v56 = vpop.permute.xlu0 %1463  ;;  %v1582_v58 = vpop.permute.xlu1 %1581 }
 0x564   : > { %v1469_v57 = vsel %vm1253_vm6, %v1464_v56, 0  ;;  %v1587_v60 = vsel %vm1253_vm6, %v1582_v58, 0 }
 0x565   : > { %2657 = vmatpush3.bf16.xpose.msra.mxu0 %v1469_v57 }
 0x566   : > { %2668 = vmatprep.subr.bf16.mxu0 %v3331_v20 }
 0x567   : > { %v1580_v59 = vpop.permute.xlu1 %1579 }
 0x56b   : > { %v1699_v61 = vpop.permute.xlu1 %1698 }
 0x56c   : > { %2659 = vmatmul.mubr.msk.bf16.vlgmr.msra.gmra.mxu0 %vm1253_vm6, %v1461_v55  ;;  %v1704_v62 = vsel %vm1253_vm6, %v1699_v61, 0 }
 0x56d   : > { %2669 = vmatpush3.bf16.xpose.msra.mxu0 %v1587_v60  ;;  %2670 = vmatprep.mubr.msk.bf16.mxu0 %vm3332_vm4, %v3331_v20 }
 0x56e   : > { %2680 = vmatprep.subr.bf16.mxu0 %v3331_v20 }
 0x56f   : > { %v1697_v63 = vpop.permute.xlu1 %1696 }
 0x574   : > { %2671 = vmatmul.mubr.msk.bf16.vlgmr.msra.gmra.mxu0 %vm1253_vm6, %v1580_v59 }
 0x575   : > { %2681 = vmatpush3.bf16.xpose.msra.mxu0 %v1704_v62  ;;  %2682 = vmatprep.mubr.msk.bf16.mxu0 %vm3332_vm4, %v3331_v20 }
 0x576   : > { %2692 = vmatprep.subr.bf16.mxu0 %v3331_v20 }
 0x57c   : > { %2683 = vmatmul.mubr.msk.bf16.vlgmr.msra.gmra.mxu0 %vm1253_vm6, %v1697_v63 }
 0x57d   : > { %2696 = vmatprep.mubr.msk.bf16.mxu0 %vm3332_vm4, %v3331_v20 }
 0x5b9   : > { %v1392_v0 = vpop.f32.mrf.mxu1 }
 0x5ba   : > { %v1398_v1 = vmul.f32 0.35355338, %v1392_v0 }
 0x5bb   : > { %v2648_v2 = vpop.f32.mrf.mxu1 }
 0x5bc   : > { %v1400_v3 = vsel %vm1399_vm7, %v1398_v1, -inf }
 0x5bd   : > { %1401 = vmax.xlane.f32.xlu1 %v1400_v3  ;;  %v1395_v4 = vpop.f32.mrf.mxu1 }
 0x5bf   : > { %v2649_v6 = vpop.f32.mrf.mxu1 }
 0x62c   : > { %v1505_v8 = vpop.f32.mrf.mxu0 }
 0x62d   : > { %v1511_v9 = vmul.f32 0.35355338, %v1505_v8 }
 0x62e   : > { %v2660_v10 = vpop.f32.mrf.mxu0 }
 0x62f   : > { %v1512_v11 = vsel %vm1399_vm7, %v1511_v9, -inf }
 0x630   : > { %1513 = vmax.xlane.f32.xlu0 %v1512_v11  ;;  %v1508_v13 = vpop.f32.mrf.mxu0 }
 0x632   : > { %v2661_v14 = vpop.f32.mrf.mxu0 }
 0x634   : > { %v1623_v15 = vpop.f32.mrf.mxu0 }
 0x635   : > { %v1629_v16 = vmul.f32 0.35355338, %v1623_v15 }
 0x636   : > { %v2672_v17 = vpop.f32.mrf.mxu0 }
 0x637   : > { %v1630_v18 = vsel %vm1399_vm7, %v1629_v16, -inf }
 0x638   : > { %1631 = vmax.xlane.f32.xlu0 %v1630_v18  ;;  %v1626_v19 = vpop.f32.mrf.mxu0 }
 0x639   : > { %v2898_v19 = vld [vmem:[%s3776_s19 + $0x8] sm:$0xff]  }
 0x63a   : > { %v2673_v21 = vpop.f32.mrf.mxu0  ;;  %2693 = vmatpush3.bf16.msra.mxu0 %v2898_v19 }
 0x63b   : > { %v2899_v21 = vld [vmem:[%s3776_s19] sm:$0xff]   ;;  %2694 = vmatprep.subr.bf16.mxu0 %v3331_v20  ;;  %s4156_s19 = scalar_lea.vmem [#allocation15], %s3729_s20 }
 0x63c   : > { %v1740_v22 = vpop.f32.mrf.mxu0 }
 0x63d   : > { %v1746_v23 = vmul.f32 0.35355338, %v1740_v22 }
 0x63e   : > { %v2684_v24 = vpop.f32.mrf.mxu0  ;;  %2695 = vmatpush3.bf16.msra.mxu0 %v2899_v21 }
 0x63f   : > { %v1747_v25 = vsel %vm1399_vm7, %v1746_v23, -inf  ;;  %2708 = vmatprep.subr.bf16.mxu0 %v3331_v20 }
 0x640   : > { %1748 = vmax.xlane.f32.xlu1 %v1747_v25  ;;  %v1743_v26 = vpop.f32.mrf.mxu0 }
 0x642   : > { %v2685_v27 = vpop.f32.mrf.mxu0 }
 0x646   : > { %v1402_v28 = vpop.xlane.xlu1 %1401 }
 0x647   : > { %v1403_v29 = vsub.f32 %v1398_v1, %v1402_v28 }
 0x649   : > { %v1404_v30 = vmul.f32 1.442695, %v1403_v29 }
 0x64b   : > { %2908 = vpow2.f32 %v1404_v30 }
 0x658   : > { %v2909_v31 = vpop.eup %2908 }
 0x659   : > { %v1406_v32 = vsel %vm1399_vm7, %v2909_v31, 0.0 }
 0x65a   : > { %1407 = vadd.xlane.f32.xlu0 %v1406_v32 }
 0x6b9   : > { %v1514_v33 = vpop.xlane.xlu0 %1513 }
 0x6ba   : > { %v1515_v34 = vsub.f32 %v1511_v9, %v1514_v33 }
 0x6bc   : > { %v1516_v35 = vmul.f32 1.442695, %v1515_v34 }
 0x6be   : > { %2910 = vpow2.f32 %v1516_v35 }
 0x6c1   : > { %v1632_v36 = vpop.xlane.xlu0 %1631 }
 0x6c2   : > { %v1633_v37 = vsub.f32 %v1629_v16, %v1632_v36 }
 0x6c4   : > { %v1634_v38 = vmul.f32 1.442695, %v1633_v37 }
 0x6c6   : > { %2912 = vpow2.f32 %v1634_v38 }
 0x6c9   : > { %v1749_v44 = vpop.xlane.xlu1 %1748 }
 0x6ca   : > { %v1750_v45 = vsub.f32 %v1746_v23, %v1749_v44  ;;  %v2900_v44 = vld [vmem:[%s3781_s5 + $0x8] sm:$0xff]  }
 0x6cb   : > { %v2911_v39 = vpop.eup %2910 }
 0x6cc   : > { %v1518_v40 = vsel %vm1399_vm7, %v2911_v39, 0.0  ;;  %v1751_v46 = vmul.f32 1.442695, %v1750_v45  ;;  %v2901_v45 = vld [vmem:[%s3781_s5] sm:$0xff]  }
 0x6cd   : > { %1519 = vadd.xlane.f32.xlu1 %v1518_v40 }
 0x6d3   : > { %v2913_v41 = vpop.eup %2912 }
 0x6d4   : > { %v1636_v42 = vsel %vm1399_vm7, %v2913_v41, 0.0 }
 0x6d5   : > { %1637 = vadd.xlane.f32.xlu0 %v1636_v42 }
 0x6de   : > { %1642 = vrot.lane.b32.xlu1 %v3871_v5, %s3336_s7 }
 0x6e3   : > { %v1408_v43 = vpop.xlane.xlu0 %1407 }
 0x6e4   : > { %2914 = vrcp.f32 %v1408_v43 }
 0x6e5   : > { %2916 = vpow2.f32 %v1751_v46 }
 0x6eb   : > { %1525 = vrot.lane.b32.xlu0 %v3871_v5, %s3335_s13 }
 0x6f1   : > { %v2915_v47 = vpop.eup %2914 }
 0x6f2   : > { %v1410_v48 = vmul.f32 %v2915_v47, %v2909_v31  ;;  %v2917_v50 = vpop.eup %2916  ;;  %v2550_v31 = vld [vmem:[%s4156_s19] ss:$0 sm:$0xff] }
 0x6f3   : > { %v1753_v51 = vsel %vm1399_vm7, %v2917_v50, 0.0 }
 0x6f4   : > { %v1411_v49 = vpack.c.bf16 %v1410_v48, %v1410_v48 }
 0x6f6   : > { %2653 = vmatmul.mubr.msk.bf16.vlgmr.msra.gmra.mxu1 %vm1399_vm7, %v1411_v49  ;;  %v2554_v49 = vld [vmem:[%s4157_s10] ss:$0 sm:$0xff] }
 0x6f7   : > { %2664 = vmatprep.mubr.msk.bf16.mxu1 %vm3332_vm4, %v3331_v20 }
 0x702   : > { %1754 = vadd.xlane.f32.xlu1 %v1753_v51  ;;  %v2555_v51 = vld [vmem:[%s930_s15] ss:$0 sm:$0xff] }
 0x713   : > { %1759 = vrot.lane.b32.xlu1 %v3871_v5, %s3337_s26 }
 0x756   : > { %v1520_v52 = vpop.xlane.xlu1 %1519 }
 0x757   : > { %2918 = vrcp.f32 %v1520_v52 }
 0x75a   : > { %v1643_v58 = vpop.permute.xlu1 %1642 }
 0x75b   : > { %v1648_v60 = vsel %vm1415_vm8, %v1643_v58, 0  ;;  %v2905_v58 = vld [vmem:[%s3795_s16] sm:$0xff]  }
 0x75e   : > { %v1638_v53 = vpop.xlane.xlu0 %1637 }
 0x75f   : > { %2920 = vrcp.f32 %v1638_v53 }
 0x762   : > { %v1526_v54 = vpop.permute.xlu0 %1525 }
 0x763   : > { %v1531_v55 = vsel %vm1415_vm8, %v1526_v54, 0 }
 0x764   : > { %v2919_v56 = vpop.eup %2918  ;;  %2663 = vmatpush3.bf16.msra.mxu1 %v1531_v55  ;;  %v2902_v55 = vld [vmem:[%s3795_s16 + $0x18] sm:$0xff]  }
 0x765   : > { %2674 = vmatprep.subr.bf16.mxu1 %v3331_v20  ;;  %v1522_v57 = vmul.f32 %v2919_v56, %v2911_v39  ;;  %v2903_v56 = vld [vmem:[%s3795_s16 + $0x10] sm:$0xff]  }
 0x767   : > { %v1523_v59 = vpack.c.bf16 %v1522_v57, %v1522_v57  ;;  %v2904_v57 = vld [vmem:[%s3795_s16 + $0x8] sm:$0xff]  }
 0x769   : > { %2665 = vmatmul.mubr.msk.bf16.vlgmr.msra.gmra.mxu1 %vm1399_vm7, %v1523_v59  ;;  %v2556_v59 = vld [vmem:[%s1070_s11] ss:$0 sm:$0xff]  ;;  %s4160_s11 = sld [smem:[#allocation30_spill]] }
 0x76a   : > { %2675 = vmatpush3.bf16.msra.mxu1 %v1648_v60  ;;  %2676 = vmatprep.mubr.msk.bf16.mxu1 %vm3332_vm4, %v3331_v20 }
 0x76b   : > { %2686 = vmatprep.subr.bf16.mxu1 %v3331_v20 }
 0x76c   : > { %v2921_v61 = vpop.eup %2920 }
 0x76d   : > { %v1640_v62 = vmul.f32 %v2921_v61, %v2913_v41 }
 0x76f   : > { %v1641_v63 = vpack.c.bf16 %v1640_v62, %v1640_v62  ;;  %p2566_p3 = scmp.ne.s32.totalorder %s4160_s11, 1 }
 0x770   : > { %s4161_s29 = sld [smem:[#allocation60_spill]] (!%p2566_p3) }
 0x771   : > { %2677 = vmatmul.mubr.msk.bf16.vlgmr.msra.gmra.mxu1 %vm1399_vm7, %v1641_v63  ;;  %s4163_s23 = sld [smem:[#allocation58_spill]] (!%p2566_p3) }
 0x772   : > { %2688 = vmatprep.mubr.msk.bf16.mxu1 %vm3332_vm4, %v3331_v20  ;;  %s4164_s26 = sld [smem:[#allocation59_spill]] (!%p2566_p3) }
 0x776   : > { %s4162_s27 = smov (!%p2566_p3), %s4161_s29 }
 0x78b   : > { %v1755_v0 = vpop.xlane.xlu1 %1754 }
 0x78c   : > { %2922 = vrcp.f32 %v1755_v0 }
 0x78f   : > { %v1760_v1 = vpop.permute.xlu1 %1759 }
 0x790   : > { %v1765_v2 = vsel %vm1415_vm8, %v1760_v1, 0 }
 0x791   : > { %2687 = vmatpush3.bf16.msra.mxu1 %v1765_v2 }
 0x792   : > { %2700 = vmatprep.subr.bf16.mxu1 %v3331_v20 }
 0x799   : > { %v2923_v3 = vpop.eup %2922 }
 0x79a   : > { %v1757_v4 = vmul.f32 %v2923_v3, %v2917_v50 }
 0x79c   : > { %v1758_v5 = vpack.c.bf16 %v1757_v4, %v1757_v4 }
 0x79e   : > { %2689 = vmatmul.mubr.msk.bf16.vlgmr.msra.gmra.mxu1 %vm1399_vm7, %v1758_v5 }
 0x79f   : > { %2704 = vmatprep.mubr.msk.bf16.mxu1 %vm3332_vm4, %v3331_v20  ;;  %2701 = vmatpush3.bf16.msra.mxu1 %v2900_v44 }
 0x7a0   : > { %2702 = vmatprep.subr.bf16.mxu1 %v3331_v20 }
 0x7a3   : > { %2703 = vmatpush3.bf16.msra.mxu1 %v2901_v45 }
 0x7b6   : > { %v1453_v6 = vpop.f32.mrf.mxu1 }
 0x7b7   : > { %1459 = vst.msk [vmem:[#allocation3] sm:$0xff] %vm1253_vm6, %v1453_v6  ;;  %v2560_v6 = vld [vmem:[%s1078_s14] ss:$0 sm:$0xff] }
 0x7b8   : > { %v2654_v7 = vpop.f32.mrf.mxu1 }
 0x7ba   : > { %v1456_v8 = vpop.f32.mrf.mxu1 }
 0x7bc   : > { %v2655_v9 = vpop.f32.mrf.mxu1 }
 0x829   : > { %v1567_v10 = vpop.f32.mrf.mxu1 }
 0x82a   : > { %1574 = vrot.lane.b32.xlu0 %v1567_v10, %s3338_s22 }
 0x82b   : > { %v2666_v11 = vpop.f32.mrf.mxu1 }
 0x82d   : > { %v1570_v13 = vpop.f32.mrf.mxu1 }
 0x82f   : > { %v2667_v14 = vpop.f32.mrf.mxu1 }
 0x831   : > { %v1684_v15 = vpop.f32.mrf.mxu1 }
 0x832   : > { %1691 = vrot.lane.b32.xlu1 %v1684_v15, %s3339_s24 }
 0x833   : > { %v2678_v16 = vpop.f32.mrf.mxu1 }
 0x835   : > { %v1687_v17 = vpop.f32.mrf.mxu1 }
 0x837   : > { %v2679_v18 = vpop.f32.mrf.mxu1 }
 0x85e   : > { %v1801_v22 = vpop.f32.mrf.mxu1 }
 0x85f   : > { %1808 = vrot.lane.b32.xlu0 %v1801_v22, %s3340_s18  ;;  %s4165_s18 = sld [smem:[#allocation61_spill]] (!%p2566_p3) }
 0x860   : > { %v2690_v23 = vpop.f32.mrf.mxu1 }
 0x862   : > { %v1804_v24 = vpop.f32.mrf.mxu1 }
 0x864   : > { %v2691_v25 = vpop.f32.mrf.mxu1 }
 0x89c   : > { %v1575_v26 = vpop.permute.xlu0 %1574 }
 0x89d   : > { %1578 = vst.msk [vmem:[#allocation3] sm:$0xff] %vm1577_vm9, %v1575_v26 }
 0x8a4   : > { %v1692_v27 = vpop.permute.xlu1 %1691 }
 0x8a5   : > { %1695 = vst.msk [vmem:[#allocation3] sm:$0xff] %vm1694_vm10, %v1692_v27 }
 0x8d1   : > { %v1809_v28 = vpop.permute.xlu0 %1808 }
 0x8d2   : > { %1812 = vst.msk [vmem:[#allocation3] sm:$0xff] %vm1811_vm11, %v1809_v28 }
 0x8d9   : > { %v1813_v29 = vld [vmem:[#allocation3] sm:$0xff] }
 0x8da   : > { %v1814_v30 = vpack.c.bf16 %v1813_v29, %v1813_v29 }
 0x8dc   : > { %2697 = vmatmul.mubr.msk.bf16.vlgmr.msra.gmra.mxu0 %vm1152_vm3, %v1814_v30 }
 0x8dd   : > { %2716 = vmatprep.mubr.msk.bf16.mxu0 %vm3332_vm4, %v3331_v20  ;;  %2709 = vmatpush3.bf16.msra.mxu0 %v2902_v55 }
 0x8de   : > { %2710 = vmatprep.subr.bf16.mxu0 %v3331_v20 }
 0x8e1   : > { %2711 = vmatpush3.bf16.msra.mxu0 %v2903_v56 }
 0x8e2   : > { %2712 = vmatprep.subr.bf16.mxu0 %v3331_v20 }
 0x8e5   : > { %2713 = vmatpush3.bf16.msra.mxu0 %v2904_v57 }
 0x8e6   : > { %2714 = vmatprep.subr.bf16.mxu0 %v3331_v20 }
 0x8e9   : > { %2715 = vmatpush3.bf16.msra.mxu0 %v2905_v58 }
 0x99c   : > { %v1875_v32 = vpop.f32.mrf.mxu0 }
 0x99d   : > { %v1876_v33 = vadd.f32 %v2550_v31, %v1875_v32 }
 0x99e   : > { %v2698_v34 = vpop.f32.mrf.mxu0 }
 0x99f   : > { %v1881_v35 = vadd.f32 %v1876_v33, %v3809_v12 }
 0x9a0   : > { %v1878_v36 = vpop.f32.mrf.mxu0 }
 0x9a1   : > { %v1884_v37 = vsel %vm1152_vm3, %v1881_v35, 0.0 }
 0x9a2   : > { %1885 = vadd.xlane.f32.xlu1 %v1884_v37  ;;  %v2699_v38 = vpop.f32.mrf.mxu0 }
 0xa2b   : > { %v1886_v39 = vpop.xlane.xlu1 %1885 }
 0xa2c   : > { %v1887_v40 = vmul.f32 0.03125, %v1886_v39 }
 0xa2e   : > { %v1888_v41 = vsub.f32 %v1881_v35, %v1887_v40 }
 0xa30   : > { %v1889_v42 = vmul.f32 %v1888_v41, %v1888_v41 }
 0xa32   : > { %v1890_v43 = vsel %vm1152_vm3, %v1889_v42, 0.0 }
 0xa33   : > { %1891 = vadd.xlane.f32.xlu0 %v1890_v43 }
 0xabc   : > { %v1892_v12 = vpop.xlane.xlu0 %1891 }
 0xabd   : > { %v1893_v46 = vmul.f32 0.03125, %v1892_v12 }
 0xabf   : > { %v1894_v47 = vadd.f32 1e-05, %v1893_v46 }
 0xac1   : > { %2924 = vrsqrt.f32 %v1894_v47 }
 0xace   : > { %v2925_v48 = vpop.eup %2924 }
 0xacf   : > { %v1896_v50 = vmul.f32 %v2925_v48, %v1888_v41 }
 0xad1   : > { %v1903_v52 = vmul.f32 %v2554_v49, %v1896_v50 }
 0xad3   : > { %v1910_v53 = vadd.f32 %v2555_v51, %v1903_v52 }
 0xad5   : > { %v1911_v54 = vpack.c.bf16 %v1910_v53, %v1910_v53 }
 0xad7   : > { %2705 = vmatmul.mubr.msk.bf16.vlgmr.msra.gmra.mxu1 %vm1152_vm3, %v1911_v54 }
 0xb97   : > { %v1972_v60 = vpop.f32.mrf.mxu1 }
 0xb98   : > { %v1973_v61 = vadd.f32 %v2556_v59, %v1972_v60 }
 0xb99   : > { %v2706_v62 = vpop.f32.mrf.mxu1 }
 0xb9a   : > { %v1979_v63 = vmul.f32 0.70710677, %v1973_v61  ;;  %v1978_v3 = vmul.f32 0.5, %v1973_v61 }
 0xb9b   : > { %v1975_v0 = vpop.f32.mrf.mxu1 }
 0xb9c   : > { %2926 = verf.f32 %v1979_v63 }
 0xb9d   : > { %v2707_v1 = vpop.f32.mrf.mxu1 }
 0xba9   : > { %v2927_v2 = vpop.eup %2926 }
 0xbaa   : > { %v1981_v4 = vadd.f32 1.0, %v2927_v2 }
 0xbac   : > { %v1982_v5 = vmul.f32 %v1981_v4, %v1978_v3 }
 0xbae   : > { %v1983_v20 = vpack.c.bf16 %v1982_v5, %v1982_v5 }
 0xbb0   : > { %2717 = vmatmul.mubr.msk.bf16.vlgmr.msra.gmra.mxu0 %vm2023_vm12, %v1983_v20 }
 0xc70   : > { %v2061_v7 = vpop.f32.mrf.mxu0 }
 0xc71   : > { %v2062_v8 = vadd.f32 %v2560_v6, %v2061_v7 }
 0xc72   : > { %v2718_v9 = vpop.f32.mrf.mxu0  ;;  %2072 = sbr.rel (%p2566_p3) target bundleno = 3710 (0xe7e), region = 152 }
 0xc73   : > { %v2067_v10 = vadd.f32 %v2062_v8, %v1881_v35 }
 0xc74   : > { %v2064_v11 = vpop.f32.mrf.mxu0 }
 0xc75   : > { %2068 = vst.msk [vmem:[#allocation2] sm:$0xff] %vm1152_vm3, %v2067_v10 }
 0xc76   : > { %v2719_v13 = vpop.f32.mrf.mxu0 }
 0xc77   : > { %v2075_v14 = vsel %vm1152_vm3, %v2067_v10, 0.0  ;;  %v2114_v21 = vld [vmem:[%s4161_s29 + $0x18] sm:$0xff]  ;;  %v3341_v22 = vmov 0.0   ;;  %v2113_v23 = vld [vmem:[%s4162_s27 + $0x10] sm:$0xff]  ;;  %vm3342_vm13 = vmmov 0   ;;  %v2112_v24 = vld [vmem:[%s4162_s27 + $0x8] sm:$0xff] }
 0xc78   : > { %2076 = vadd.xlane.f32.xlu0 %v2075_v14  ;;  %2720 = vmatprep.subr.mxu0 %v3341_v22  ;;  %v2111_v25 = vld [vmem:[%s4162_s27] sm:$0xff]  ;;  %vm2189_vm14 = vcmask 57344  }
 0xc79   : > { %2728 = vmatprep.mubr.msk.f32.mxu0 %vm3342_vm13, %v3341_v22  ;;  %2721 = vmatpush3.msra.mxu0 %v2114_v21  ;;  %v2567_v30 = vld [vmem:[%s4163_s23] ss:$0 sm:$0xff] }
 0xc7a   : > { %2722 = vmatprep.subr.mxu0 %v3341_v22  ;;  %v2568_v32 = vld [vmem:[%s4164_s26] ss:$0 sm:$0xff] }
 0xc7b   : > { %2723 = vmatpush3.msra.mxu0 %v2113_v23  ;;  %v2115_v43 = vld [vmem:[%s4165_s18] sm:$0x1] }
 0xc7c   : > { %2724 = vmatprep.subr.mxu0 %v3341_v22 }
 0xc7d   : > { %2725 = vmatpush3.msra.mxu0 %v2112_v24 }
 0xc7e   : > { %2726 = vmatprep.subr.mxu0 %v3341_v22 }
 0xc7f   : > { %2727 = vmatpush3.msra.mxu0 %v2111_v25 }
 0xd01   : > { %v2077_v15 = vpop.xlane.xlu0 %2076 }
 0xd02   : > { %v2078_v16 = vmul.f32 0.03125, %v2077_v15 }
 0xd04   : > { %v2079_v17 = vsub.f32 %v2067_v10, %v2078_v16 }
 0xd06   : > { %v2080_v18 = vmul.f32 %v2079_v17, %v2079_v17 }
 0xd08   : > { %v2081_v19 = vsel %vm1152_vm3, %v2080_v18, 0.0 }
 0xd09   : > { %2082 = vadd.xlane.f32.xlu0 %v2081_v19 }
 0xd92   : > { %v2083_v26 = vpop.xlane.xlu0 %2082 }
 0xd93   : > { %v2084_v27 = vmul.f32 0.03125, %v2083_v26 }
 0xd95   : > { %v2085_v28 = vadd.f32 1e-05, %v2084_v27 }
 0xd97   : > { %2928 = vrsqrt.f32 %v2085_v28 }
 0xda4   : > { %v2929_v29 = vpop.eup %2928 }
 0xda5   : > { %v2087_v31 = vmul.f32 %v2929_v29, %v2079_v17 }
 0xda7   : > { %v2094_v33 = vmul.f32 %v2567_v30, %v2087_v31 }
 0xda9   : > { %v2101_v34 = vadd.f32 %v2568_v32, %v2094_v33 }
 0xdab   : > { %v2102_v35 = vsel %vm1152_vm3, %v2101_v34, 0.0 }
 0xdac   : > { %v2103_v36 = vrot.slane %v2102_v35, 4 }
 0xdae   : > { %v2104_v37 = vadd.f32 %v2103_v36, %v2102_v35 }
 0xdb0   : > { %v2105_v38 = vrot.slane %v2104_v37, 2 }
 0xdb2   : > { %v2106_v39 = vadd.f32 %v2105_v38, %v2104_v37 }
 0xdb4   : > { %v2107_v40 = vrot.slane %v2106_v39, 1 }
 0xdb6   : > { %v2108_v41 = vadd.f32 %v2107_v40, %v2106_v39 }
 0xdb8   : > { %v2110_v42 = vmul.f32 0.125, %v2108_v41 }
 0xdba   : > { %2729 = vmatmul.mubr.msk.f32.vlgmr.msra.gmra.mxu0 %vm1152_vm3, %v2110_v42 }
 0xe7a   : > { %v2185_v44 = vpop.f32.mrf.mxu0 }
 0xe7b   : > { %v2186_v45 = vadd.f32 %v2185_v44, %v2115_v43 }
 0xe7c   : > { %v2730_v12 = vpop.f32.mrf.mxu0 }
 0xe7d   : > { %2190 = vst.msk [vmem:[%s3800_s6] sm:$0x1] %vm2189_vm14, %v2186_v45 }
 0xe7e PF: > { %s4166_s19 = sld [smem:[#allocation31_spill]]  ;;  %s2204_s15 = sshll.u32 %s3800_s6, 4  ;;  %s2205_s15 = int_to_ptr.vmem [resolvable:$true] %s2204_s15 }
 0xe7f   : > { %s4167_s17 = sld [smem:[#allocation62_spill]]  ;;  %s4168_s9 = sand.u32 1, %s3280_s28  }
 0xe80   : > { %s2192_s11 = scalar_lea.sflag [#allocation6], %s4168_s9  ;;  %s3180_s1 = scalar_lea.vmem %s2205_s15, 16 }
 0xe81   : > { %p3181_p9 = scmp.ne.s32.totalorder %s2205_s15, %s3180_s1  ;;  %p4169_p11 = scmp.ne.s32.totalorder %s4122_s30, 0 }
 0xe82   : > { %s3343_s14 = smov [#allocation19]  }
 0xe83   : > { %p3182_p1 = pnand %p3181_p9, %p4169_p11  ;;  %s3184_s29 = sshll.u32 %s3343_s14, 4  ;;  %s3185_s29 = int_to_ptr.vmem [resolvable:$false] %s3184_s29 }
 0xe84   : > { %s2570_s10 = sshll.u32 %s4166_s19, 4  ;;  %s3186_s4 = scalar_lea.vmem %s3185_s29, 32 }
 0xe85   : > { %s2202_s16 = scalar_lea.hbm %s4167_s17, %s2570_s10  ;;  %p3183_p4 = pneg %p3182_p1 }
 0xe86   : > { %p3187_p0 = scmp.lt.s32.totalorder %s2205_s15, %s3185_s29  ;;  %p3188_p12 = scmp.lt.s32.totalorder %s3186_s4, %s3180_s1 }
 0xe88   : > { %p3189_p5 = por %p3188_p12, %p3187_p0 }
 0xe8a   : > { %p3190_p8 = pnand %p3189_p5, %p3183_p4 }
 0xe8c   : > { %3193 = shalt.err (!%p3190_p8)
}
 0xe8d   : > { %s3194_s3 = scalar_lea.hbm %s2202_s16, 16  ;;  %s3198_s0 = scalar_lea.hbm %s4167_s17, 32 }
 0xe8e   : > { %p3195_p6 = scmp.ne.s32.totalorder %s2202_s16, %s3194_s3  ;;  %p3199_p13 = scmp.lt.s32.totalorder %s2202_s16, %s4167_s17 }
 0xe8f   : > { %p3200_p10 = scmp.lt.s32.totalorder %s3198_s0, %s3194_s3 }
 0xe90   : > { %p3196_p2 = pnand %p3195_p6, %p4169_p11 }
 0xe91   : > { %p3201_p3 = por %p3200_p10, %p3199_p13 }
 0xe92   : > { %p3197_p7 = pneg %p3196_p2 }
 0xe94   : > { %p3202_p9 = pnand %p3201_p3, %p3197_p7 }
 0xe96   : > { %3205 = shalt.err (!%p3202_p9)
}
 0xe97   : > { %2751 = dma.vmem_to_hbm [thread:$0]  (%p4169_p11), %s2205_s15, 16, %s2202_s16, %s2192_s11  }
 0xe98 PF: > { %s4170_s25 = sld [smem:[#allocation34_spill]] }
 0xe99   : > { %s4171_s2 = sld [smem:[#allocation26_spill]] }
 0xe9a   : > { %s4172_s23 = sld [smem:[#allocation39_spill]] }
 0xe9e   : > { %p2789_p1 = scmp.ge.s32.totalorder %s4170_s25, 2 }
 0xe9f   : > { %s2216_s13 = sand.u32 1, %s4171_s2  }
 0xea0   : > { %p4173_p4 = scmp.ne.s32.totalorder %s4172_s23, 0  ;;  %s2217_s7 = scalar_lea.sflag [#allocation6], %s2216_s13 }
 0xea2   : > { %p2783_p0 = pnand %p2789_p1, %p4173_p4 }
 0xea4   : > { %p2784_p12 = pneg %p2783_p0 }
 0xea6   : > { %3271 = dma.done.wait (%p2784_p12), %s2217_s7, 16  }
 0xea7   : > { %3273 = vsyncadd (%p2784_p12), %s2217_s7, 4294967280  ;;  %s48_s6 = sadd.s32 1, %s4170_s25   ;;  %s4174_s26 = sld [smem:[#allocation27_spill]] }
 0xea8   : > { %p45_p5 = scmp.ge.s32.totalorder %s48_s6, 6   ;;  %s4175_s29 = sld [smem:[#allocation38_spill]] }
 0xea9   : > { %s4176_s30 = sld [smem:[#allocation28_spill]]  ;;  %s4183_s3 = smov %s3280_s28 }
 0xeaa   : > { %s4177_s4 = sld [smem:[#allocation29_spill]] }
 0xeab   : > { %s4178_s0 = sld [smem:[#allocation37_spill]]  ;;  %47 = sbr.rel (!%p45_p5) target bundleno = 40 (0x28), region = 270 }
 0xeac   : > { %s4179_s23 = sld [smem:[#allocation32_spill]] }
 0xead   : > { %s4180_s1 = sld [smem:[#allocation33_spill]]  ;;  %s4184_s28 = smov %s4174_s26 }
 0xeae   : > { %s4181_s5 = sld [smem:[#allocation35_spill]] }
 0xeaf   : > { %s4182_s24 = sld [smem:[#allocation36_spill]] }
 0xeb0   :  { %2221 = vsyncpa [#allocation5], 1 }
 0xeb1   :  { %2223 = vsyncpa [#allocation5 + $0x1], 1 }
 0xeb2   :  { %2224 = vsyncpa [#allocation8], 1 }
 0xeb3   :  { %2226 = vsyncpa [#allocation8 + $0x1], 1 }
 0xeb4   :  { %2227 = vsyncpa [#allocation11], 1 }
 0xeb5   :  { %2229 = vsyncpa [#allocation11 + $0x1], 1 }
 0xeb6   :  { %2230 = vsyncpa [#allocation14], 1 }
 0xeb7   :  { %2232 = vsyncpa [#allocation14 + $0x1], 1 }
 0xeb8   :  { %2233 = vsyncpa [#allocation17], 1 }
 0xeb9   :  { %2235 = vsyncpa [#allocation17 + $0x1], 1 }
 0xeba   :  { %2236 = vsyncpa [#allocation6], 1 }
 0xebb   :  { %2238 = vsyncpa [#allocation6 + $0x1], 1 }

</bundles_post_ra>
